<compile_context>
chip_gen: v7x
topology: tpu7x:2x2x1
jax: 0.10.0
libtpu: 0.0.40
codegen_flags: <defaults>
</compile_context>

<pallas_src>
import functools

import jax
import jax.numpy as jnp
from jax.experimental import pallas as pl
from jax.experimental.pallas import tpu as pltpu

# Finite stand-in for -inf: exp(_NEG_BIG - anything_reasonable) underflows to
# exactly 0, and (-_NEG_BIG) - (-_NEG_BIG) = 0 (no NaN), so empty slices/tiles
# are handled without guards.
_NEG_BIG = -1e30


def _clam_sb_kernel(x_ref, wfc_ref, bfc_ref, wa_ref, ba_ref, wa2_ref, ba2_ref,
                    m_out_ref, l_out_ref, acc_out_ref,
                    m_sc, l_sc, acc_sc,
                    *, n_rows, tn, rows_per_slice):
    i = pl.program_id(1)           # row-tile step inside this slice (reduction)

    @pl.when(i == 0)
    def _():
        m_sc[...] = jnp.full(m_sc.shape, _NEG_BIG, m_sc.dtype)
        l_sc[...] = jnp.zeros(l_sc.shape, l_sc.dtype)
        acc_sc[...] = jnp.zeros(acc_sc.shape, acc_sc.dtype)

    # Logical row indices of this tile (masking only; the x block index itself
    # is clamped in the index_map so the DMA never runs off the array).
    row = (pl.program_id(0) * rows_per_slice + i * tn
           + jax.lax.broadcasted_iota(jnp.int32, (tn, 1), 0))
    valid = row < n_rows

    # h = fc(features); Dropout(p=0.2) is identity at inference.
    # TODO(synk): training-mode dropout (0.2 after fc, 0.25 inside Attn_Net)
    # not implemented.
    h = (jnp.dot(x_ref[...], wfc_ref[...], preferred_element_type=jnp.float32)
         + bfc_ref[...])
    # Mask invalid rows on h (128 lanes) instead of on x (512 lanes): cheaper,
    # and it keeps OOB garbage (NaN/Inf) in the padded tail of the last tile
    # from poisoning the p^T @ h reduction below.
    h = jnp.where(valid, h, 0.0)

    # Attn_Net: Linear(D,D) + Tanh, then Linear(D,1) as a VPU multiply + lane
    # reduce (a 1-column-wide MXU output would buy nothing here).
    a = jnp.tanh(jnp.dot(h, wa_ref[...], preferred_element_type=jnp.float32)
                 + ba_ref[...])
    s = jnp.sum(a * wa2_ref[...], axis=-1, keepdims=True) + ba2_ref[...]  # [TN,1]
    s = jnp.where(valid, s, _NEG_BIG)

    # Online softmax accumulation of M = softmax(s over all N)^T @ h.
    m_old = m_sc[...]                                              # [1,1]
    m_new = jnp.maximum(m_old, jnp.max(s, axis=0, keepdims=True))  # [1,1]
    alpha = jnp.exp(m_old - m_new)
    p = jnp.exp(s - m_new)                                         # [TN,1]
    l_sc[...] = alpha * l_sc[...] + jnp.sum(p, axis=0, keepdims=True)
    # p^T @ h on the MXU (contract the TN axis) instead of a cross-sublane
    # VPU/XLU add chain.
    acc_sc[...] = alpha * acc_sc[...] + jax.lax.dot_general(
        p, h, (((0,), (0,)), ((), ())), preferred_element_type=jnp.float32)
    m_sc[...] = m_new

    # Emit this slice's partial (m, l, acc); merged (log-sum-exp) in the
    # wrapper epilogue together with the classifier.
    @pl.when(i == pl.num_programs(1) - 1)
    def _():
        m_out_ref[...] = jnp.broadcast_to(m_sc[...], m_out_ref.shape)
        l_out_ref[...] = jnp.broadcast_to(l_sc[...], l_out_ref.shape)
        acc_out_ref[...] = jnp.broadcast_to(acc_sc[...], acc_out_ref.shape)


def clam_sb_forward(features, params, *, tn=2048, num_slices=None,
                    stream_dtype=jnp.bfloat16):
    """CLAM_SB forward (inference, label=None).

    features: [N, 512].  Returns (logits [n_classes], total_inst_loss=0.0).
    stream_dtype: dtype used to stream features / W_fc from HBM (bf16 halves
    the dominant HBM read; accumulation stays f32). Use jnp.float32 for
    bit-tight results.
    """
    wfc, bfc, wa, ba, wa2, ba2, wc, bc = params
    N, Lin = features.shape
    D = wfc.shape[1]

    # bf16 (or f32) streaming of the dominant HBM traffic.
    x = features.astype(stream_dtype)
    wfc_s = wfc.astype(stream_dtype)

    # Row tile: multiple of 16 sublanes (bf16 packing); clamp only for tiny bags.
    tn = min(tn, max(16, ((N + 15) // 16) * 16))
    n_blocks = pl.cdiv(N, tn)

    # Split the N reduction across TensorCores (v7x has 2; on v5e/v6e this is
    # just an outer sequential loop, numerically identical).
    if num_slices is None:
        num_slices = 2 if n_blocks >= 2 else 1
    steps_per_slice = pl.cdiv(n_blocks, num_slices)
    rows_per_slice = steps_per_slice * tn
    last_block = n_blocks - 1

    def x_map(sl, i):
        # Clamp so padding steps re-read the last in-range tile (their rows are
        # fully masked in-kernel) instead of DMA-ing past the end of x.
        return (jnp.minimum(sl * steps_per_slice + i, last_block), 0)

    const = lambda sl, i: (0, 0)
    part = lambda sl, i: (sl, 0, 0)

    bytes_x = jnp.dtype(stream_dtype).itemsize
    cost = pl.CostEstimate(
        flops=2 * N * (Lin * D + D * D + 2 * D),
        transcendentals=N * D + 2 * N,
        bytes_accessed=(bytes_x * (N * Lin + Lin * D)
                        + 4 * (D * D + 3 * D + 1 + num_slices * 8 * (2 * 128 + D))),
    )

    m_p, l_p, acc_p = pl.pallas_call(
        functools.partial(_clam_sb_kernel, n_rows=N, tn=tn,
                          rows_per_slice=rows_per_slice),
        out_shape=(
            jax.ShapeDtypeStruct((num_slices, 8, 128), jnp.float32),  # running max
            jax.ShapeDtypeStruct((num_slices, 8, 128), jnp.float32),  # softmax denom
            jax.ShapeDtypeStruct((num_slices, 8, D), jnp.float32),    # sum p*h
        ),
        grid=(num_slices, steps_per_slice),
        in_specs=[
            pl.BlockSpec((tn, Lin), x_map),            # features, streamed over N
            pl.BlockSpec((Lin, D), const),             # W_fc^T   (VMEM-resident)
            pl.BlockSpec((1, D), const),               # b_fc
            pl.BlockSpec((D, D), const),               # W_attn^T
            pl.BlockSpec((1, D), const),               # b_attn
            pl.BlockSpec((1, D), const),               # w_attn2 row (D -> 1)
            pl.BlockSpec((1, 1), const),               # b_attn2
        ],
        out_specs=(
            pl.BlockSpec((1, 8, 128), part),
            pl.BlockSpec((1, 8, 128), part),
            pl.BlockSpec((1, 8, D), part),
        ),
        scratch_shapes=[
            pltpu.VMEM((1, 1), jnp.float32),           # running max
            pltpu.VMEM((1, 1), jnp.float32),           # running denom
            pltpu.VMEM((1, D), jnp.float32),           # running weighted-sum of h
        ],
        compiler_params=pltpu.CompilerParams(
            # slice axis -> both TensorCores on v7x; step axis carries the
            # online-softmax accumulator -> reduction axis.
            dimension_semantics=("parallel", "arbitrary")),
        cost_estimate=cost,
    )(x, wfc_s, bfc, wa, ba, wa2, ba2)

    # Log-sum-exp merge of the per-slice online-softmax partials + classifier.
    m_part = m_p[:, 0, 0]                           # [num_slices]
    l_part = l_p[:, 0, 0]                           # [num_slices]
    acc_part = acc_p[:, 0, :]                       # [num_slices, D]
    m_glob = jnp.max(m_part)
    scale = jnp.exp(m_part - m_glob)                # all-masked slice -> exactly 0
    denom = jnp.sum(scale * l_part)
    M = jnp.sum(scale[:, None] * acc_part, axis=0) / denom      # [D]
    logits = M @ wc + bc.reshape(-1)                            # [n_classes]

    # TODO(synk): instance_eval branch (top-k gather + CrossEntropyLoss) not
    # implemented; with the default label=None the torch module hits its
    # except-path and returns 0.0, reproduced here.
    total_inst_loss = 0.0
    return logits, total_inst_loss


def init_params(key, Lin=512, D=128, n_classes=2):
    """Deterministic synthetic init (xavier-normal-ish weights, small biases).
    Weights stored pre-transposed as [in_features, out_features]."""
    ks = jax.random.split(key, 8)

    def xavier(k, fan_in, fan_out, shape):
        std = jnp.sqrt(2.0 / (fan_in + fan_out))
        return std * jax.random.normal(k, shape, jnp.float32)

    wfc = xavier(ks[0], Lin, D, (Lin, D))
    bfc = 0.01 * jax.random.normal(ks[1], (1, D), jnp.float32)
    wa = xavier(ks[2], D, D, (D, D))
    ba = 0.01 * jax.random.normal(ks[3], (1, D), jnp.float32)
    wa2 = xavier(ks[4], D, 1, (1, D))            # Attn_Net second Linear, as a row
    ba2 = 0.01 * jax.random.normal(ks[5], (1, 1), jnp.float32)
    wc = xavier(ks[6], D, n_classes, (D, n_classes))
    bc = 0.01 * jax.random.normal(ks[7], (1, n_classes), jnp.float32)
    return wfc, bfc, wa, ba, wa2, ba2, wc, bc


if __name__ == "__main__":
    # Small bag: N=200 instances (not a multiple of the tile -> exercises the
    # partial-tile masking), feature dim 512, hidden 128, 2 classes.
    N, Lin, D, n_classes = 200, 512, 128, 2

    key = jax.random.PRNGKey(0)
    kx, kp = jax.random.split(key)
    x = jax.random.normal(kx, (N, Lin), dtype=jnp.float32)
    params = init_params(kp, Lin=Lin, D=D, n_classes=n_classes)
    wfc, bfc, wa, ba, wa2, ba2, wc, bc = params

    # Plain-JAX f32 reference of the CLAM_SB forward (inference, label=None).
    h_ref = x @ wfc + bfc
    a_ref = jnp.tanh(h_ref @ wa + ba)
    s_ref = a_ref @ wa2.T + ba2                 # [N, 1]
    A_ref = jax.nn.softmax(s_ref.T, axis=1)     # [1, N]
    M_ref = A_ref @ h_ref                       # [1, D]
    logits_ref = jnp.squeeze(M_ref @ wc + bc)   # [n_classes]

    # Reference with the bf16 rounding of the streamed operands applied
    # (products exact, f32 accumulation -> matches the bf16 MXU path closely).
    x16 = x.astype(jnp.bfloat16).astype(jnp.float32)
    wfc16 = wfc.astype(jnp.bfloat16).astype(jnp.float32)
    h16 = x16 @ wfc16 + bfc
    a16 = jnp.tanh(h16 @ wa + ba)
    s16 = a16 @ wa2.T + ba2
    A16 = jax.nn.softmax(s16.T, axis=1)
    M16 = A16 @ h16
    logits_ref16 = jnp.squeeze(M16 @ wc + bc)

    # 1) f32 streaming, small tiles + 2-way slice split: exercises the
    #    partial-tile mask and the cross-slice log-sum-exp merge, bit-tight.
    logits_f32, inst_loss = clam_sb_forward(x, params, tn=64, num_slices=2,
                                            stream_dtype=jnp.float32)
    jax.block_until_ready(logits_f32)
    assert logits_f32.shape == (n_classes,)
    assert inst_loss == 0.0
    assert jnp.allclose(logits_f32, logits_ref, atol=1e-4, rtol=1e-4), (
        logits_f32, logits_ref)

    # 2) Default fast path: bf16 streaming, large tile (clamped for this tiny
    #    bag).  Check against the bf16-rounded reference tightly and against
    #    the pure f32 reference loosely (bf16 rounding of the 512-deep fc
    #    contraction exceeds 1e-4 by design).
    logits_bf16, _ = clam_sb_forward(x, params)
    jax.block_until_ready(logits_bf16)
    assert logits_bf16.shape == (n_classes,)
    assert jnp.allclose(logits_bf16, logits_ref16, atol=1e-2, rtol=1e-2), (
        logits_bf16, logits_ref16)
    assert jnp.allclose(logits_bf16, logits_ref, atol=2e-1, rtol=2e-1), (
        logits_bf16, logits_ref)

    print("KERNEL_OK")
</pallas_src>

<mosaic_0001>
module attributes {stable_mosaic.version = 11 : i64} {
  func.func @_clam_sb_kernel(%arg0: i32, %arg1: i32, %arg2: memref<64x512xf32, #tpu.memory_space<vmem>>, %arg3: memref<512x128xf32, #tpu.memory_space<vmem>>, %arg4: memref<1x128xf32, #tpu.memory_space<vmem>>, %arg5: memref<128x128xf32, #tpu.memory_space<vmem>>, %arg6: memref<1x128xf32, #tpu.memory_space<vmem>>, %arg7: memref<1x128xf32, #tpu.memory_space<vmem>>, %arg8: memref<1x1xf32, #tpu.memory_space<vmem>>, %arg9: memref<1x8x128xf32, #tpu.memory_space<vmem>>, %arg10: memref<1x8x128xf32, #tpu.memory_space<vmem>>, %arg11: memref<1x8x128xf32, #tpu.memory_space<vmem>>, %arg12: memref<1x1xf32, #tpu.memory_space<vmem>>, %arg13: memref<1x1xf32, #tpu.memory_space<vmem>>, %arg14: memref<1x128xf32, #tpu.memory_space<vmem>>) attributes {dimension_semantics = [#tpu.dimension_semantics<parallel>, #tpu.dimension_semantics<arbitrary>], iteration_bounds = array<i64: 2, 2>, scalar_prefetch = 0 : i64, scratch_operands = 3 : i64, tpu.core_type = #tpu.core_type<tc>, window_params = [{transform_indices = @transform_0, window_bounds = array<i64: 64, 512>}, {pipeline_mode = #tpu.pipeline_mode<synchronous>, transform_indices = @transform_1, window_bounds = array<i64: 512, 128>}, {pipeline_mode = #tpu.pipeline_mode<synchronous>, transform_indices = @transform_2, window_bounds = array<i64: 1, 128>}, {pipeline_mode = #tpu.pipeline_mode<synchronous>, transform_indices = @transform_3, window_bounds = array<i64: 128, 128>}, {pipeline_mode = #tpu.pipeline_mode<synchronous>, transform_indices = @transform_4, window_bounds = array<i64: 1, 128>}, {pipeline_mode = #tpu.pipeline_mode<synchronous>, transform_indices = @transform_5, window_bounds = array<i64: 1, 128>}, {pipeline_mode = #tpu.pipeline_mode<synchronous>, transform_indices = @transform_6, window_bounds = array<i64: 1, 1>}, {transform_indices = @transform_7, window_bounds = array<i64: 1, 8, 128>}, {transform_indices = @transform_8, window_bounds = array<i64: 1, 8, 128>}, {transform_indices = @transform_9, window_bounds = array<i64: 1, 8, 128>}]} {
    %c0_i32 = arith.constant 0 : i32
    %0 = arith.cmpi eq, %arg1, %c0_i32 : i32
    %1 = arith.extui %0 : i1 to i32
    %c0_i32_0 = arith.constant 0 : i32
    %2 = arith.cmpi ne, %1, %c0_i32_0 : i32
    scf.if %2 {
      %cst_34 = arith.constant -1.000000e+30 : f32
      %62 = vector.broadcast %cst_34 : f32 to vector<1x1xf32>
      %c0_35 = arith.constant 0 : index
      %c0_36 = arith.constant 0 : index
      %63 = vector.load %arg12[%c0_35, %c0_36] : memref<1x1xf32, #tpu.memory_space<vmem>>, vector<1x1xf32>
      tpu.vector_store %arg12[%c0_35, %c0_36], %62 {strides = array<i32>} : memref<1x1xf32, #tpu.memory_space<vmem>>, vector<1x1xf32>,
      %cst_37 = arith.constant 0.000000e+00 : f32
      %64 = vector.broadcast %cst_37 : f32 to vector<1x1xf32>
      %c0_38 = arith.constant 0 : index
      %c0_39 = arith.constant 0 : index
      %65 = vector.load %arg13[%c0_38, %c0_39] : memref<1x1xf32, #tpu.memory_space<vmem>>, vector<1x1xf32>
      tpu.vector_store %arg13[%c0_38, %c0_39], %64 {strides = array<i32>} : memref<1x1xf32, #tpu.memory_space<vmem>>, vector<1x1xf32>,
      %cst_40 = arith.constant 0.000000e+00 : f32
      %66 = vector.broadcast %cst_40 : f32 to vector<1x128xf32>
      %c0_41 = arith.constant 0 : index
      %c0_42 = arith.constant 0 : index
      %67 = vector.load %arg14[%c0_41, %c0_42] : memref<1x128xf32, #tpu.memory_space<vmem>>, vector<1x128xf32>
      tpu.vector_store %arg14[%c0_41, %c0_42], %66 {strides = array<i32>} : memref<1x128xf32, #tpu.memory_space<vmem>>, vector<1x128xf32>,
    } else {
    }
    %c128_i32 = arith.constant 128 : i32
    %3 = arith.muli %arg0, %c128_i32 : i32
    %c64_i32 = arith.constant 64 : i32
    %4 = arith.muli %arg1, %c64_i32 : i32
    %5 = arith.addi %3, %4 : i32
    %6 = tpu.iota {dimensions = array<i32: 0>} : vector<64x1xi32>
    %7 = vector.broadcast %5 : i32 to vector<64x1xi32>
    %8 = arith.addi %7, %6 : vector<64x1xi32>
    %c200_i32 = arith.constant 200 : i32
    %9 = vector.broadcast %c200_i32 : i32 to vector<64x1xi32>
    %10 = arith.cmpi slt, %8, %9 : vector<64x1xi32>
    %c0 = arith.constant 0 : index
    %c0_1 = arith.constant 0 : index
    %11 = vector.load %arg2[%c0, %c0_1] : memref<64x512xf32, #tpu.memory_space<vmem>>, vector<64x512xf32>
    %c0_2 = arith.constant 0 : index
    %c0_3 = arith.constant 0 : index
    %12 = vector.load %arg3[%c0_2, %c0_3] : memref<512x128xf32, #tpu.memory_space<vmem>>, vector<512x128xf32>
    %cst = arith.constant dense<0.000000e+00> : vector<64x128xf32>
    %13 = tpu.matmul %11, %12, %cst {dimension_numbers = #tpu.dot_dimension_numbers<[1], [0], [0], [1], [0, 0, 1, 1], [], []>} : vector<64x512xf32>, vector<512x128xf32>, vector<64x128xf32> -> vector<64x128xf32>
    %c0_4 = arith.constant 0 : index
    %c0_5 = arith.constant 0 : index
    %14 = vector.load %arg4[%c0_4, %c0_5] : memref<1x128xf32, #tpu.memory_space<vmem>>, vector<1x128xf32>
    %15 = vector.broadcast %14 : vector<1x128xf32> to vector<64x128xf32>
    %16 = arith.addf %13, %15 : vector<64x128xf32>
    %cst_6 = arith.constant 0.000000e+00 : f32
    %17 = vector.shape_cast %10 : vector<64x1xi1> to vector<64x1xi1>
    %18 = vector.broadcast %17 : vector<64x1xi1> to vector<64x128xi1>
    %19 = vector.broadcast %cst_6 : f32 to vector<64x128xf32>
    %20 = arith.select %18, %16, %19 : vector<64x128xi1>, vector<64x128xf32>
    %c0_7 = arith.constant 0 : index
    %c0_8 = arith.constant 0 : index
    %21 = vector.load %arg5[%c0_7, %c0_8] : memref<128x128xf32, #tpu.memory_space<vmem>>, vector<128x128xf32>
    %cst_9 = arith.constant dense<0.000000e+00> : vector<64x128xf32>
    %22 = tpu.matmul %20, %21, %cst_9 {dimension_numbers = #tpu.dot_dimension_numbers<[1], [0], [0], [1], [0, 0, 1, 1], [], []>} : vector<64x128xf32>, vector<128x128xf32>, vector<64x128xf32> -> vector<64x128xf32>
    %c0_10 = arith.constant 0 : index
    %c0_11 = arith.constant 0 : index
    %23 = vector.load %arg6[%c0_10, %c0_11] : memref<1x128xf32, #tpu.memory_space<vmem>>, vector<1x128xf32>
    %24 = vector.broadcast %23 : vector<1x128xf32> to vector<64x128xf32>
    %25 = arith.addf %22, %24 : vector<64x128xf32>
    %26 = math.tanh %25 : vector<64x128xf32>
    %c0_12 = arith.constant 0 : index
    %c0_13 = arith.constant 0 : index
    %27 = vector.load %arg7[%c0_12, %c0_13] : memref<1x128xf32, #tpu.memory_space<vmem>>, vector<1x128xf32>
    %28 = vector.broadcast %27 : vector<1x128xf32> to vector<64x128xf32>
    %29 = arith.mulf %26, %28 : vector<64x128xf32>
    %cst_14 = arith.constant dense<0.000000e+00> : vector<64xf32>
    %30 = vector.multi_reduction <add>, %29, %cst_14 [1] : vector<64x128xf32> to vector<64xf32>
    %31 = vector.shape_cast %30 : vector<64xf32> to vector<64x1xf32>
    %c0_15 = arith.constant 0 : index
    %c0_16 = arith.constant 0 : index
    %32 = vector.load %arg8[%c0_15, %c0_16] : memref<1x1xf32, #tpu.memory_space<vmem>>, vector<1x1xf32>
    %33 = vector.broadcast %32 : vector<1x1xf32> to vector<64x1xf32>
    %34 = arith.addf %31, %33 : vector<64x1xf32>
    %cst_17 = arith.constant -1.000000e+30 : f32
    %35 = vector.broadcast %cst_17 : f32 to vector<64x1xf32>
    %36 = arith.select %10, %34, %35 : vector<64x1xi1>, vector<64x1xf32>
    %c0_18 = arith.constant 0 : index
    %c0_19 = arith.constant 0 : index
    %37 = vector.load %arg12[%c0_18, %c0_19] : memref<1x1xf32, #tpu.memory_space<vmem>>, vector<1x1xf32>
    %cst_20 = arith.constant dense<0xFF800000> : vector<1xf32>
    %38 = vector.multi_reduction <maximumf>, %36, %cst_20 [0] : vector<64x1xf32> to vector<1xf32>
    %39 = vector.shape_cast %38 : vector<1xf32> to vector<1x1xf32>
    %40 = arith.maximumf %37, %39 : vector<1x1xf32>
    %41 = arith.subf %37, %40 : vector<1x1xf32>
    %42 = math.exp %41 : vector<1x1xf32>
    %43 = vector.broadcast %40 : vector<1x1xf32> to vector<64x1xf32>
    %44 = arith.subf %36, %43 : vector<64x1xf32>
    %45 = math.exp %44 : vector<64x1xf32>
    %c0_21 = arith.constant 0 : index
    %c0_22 = arith.constant 0 : index
    %46 = vector.load %arg13[%c0_21, %c0_22] : memref<1x1xf32, #tpu.memory_space<vmem>>, vector<1x1xf32>
    %47 = arith.mulf %42, %46 : vector<1x1xf32>
    %cst_23 = arith.constant dense<0.000000e+00> : vector<1xf32>
    %48 = vector.multi_reduction <add>, %45, %cst_23 [0] : vector<64x1xf32> to vector<1xf32>
    %49 = vector.shape_cast %48 : vector<1xf32> to vector<1x1xf32>
    %50 = arith.addf %47, %49 : vector<1x1xf32>
    %c0_24 = arith.constant 0 : index
    %c0_25 = arith.constant 0 : index
    %51 = vector.load %arg13[%c0_24, %c0_25] : memref<1x1xf32, #tpu.memory_space<vmem>>, vector<1x1xf32>
    tpu.vector_store %arg13[%c0_24, %c0_25], %50 {strides = array<i32>} : memref<1x1xf32, #tpu.memory_space<vmem>>, vector<1x1xf32>,
    %c0_26 = arith.constant 0 : index
    %c0_27 = arith.constant 0 : index
    %52 = vector.load %arg14[%c0_26, %c0_27] : memref<1x128xf32, #tpu.memory_space<vmem>>, vector<1x128xf32>
    %53 = vector.broadcast %42 : vector<1x1xf32> to vector<1x128xf32>
    %54 = arith.mulf %53, %52 : vector<1x128xf32>
    %cst_28 = arith.constant dense<0.000000e+00> : vector<1x128xf32>
    %55 = tpu.matmul %45, %20, %cst_28 {dimension_numbers = #tpu.dot_dimension_numbers<[0], [0], [1], [1], [0, 1, 1, 1], [], []>} : vector<64x1xf32>, vector<64x128xf32>, vector<1x128xf32> -> vector<1x128xf32>
    %56 = arith.addf %54, %55 : vector<1x128xf32>
    %c0_29 = arith.constant 0 : index
    %c0_30 = arith.constant 0 : index
    %57 = vector.load %arg14[%c0_29, %c0_30] : memref<1x128xf32, #tpu.memory_space<vmem>>, vector<1x128xf32>
    tpu.vector_store %arg14[%c0_29, %c0_30], %56 {strides = array<i32>} : memref<1x128xf32, #tpu.memory_space<vmem>>, vector<1x128xf32>,
    %c0_31 = arith.constant 0 : index
    %c0_32 = arith.constant 0 : index
    %58 = vector.load %arg12[%c0_31, %c0_32] : memref<1x1xf32, #tpu.memory_space<vmem>>, vector<1x1xf32>
    tpu.vector_store %arg12[%c0_31, %c0_32], %40 {strides = array<i32>} : memref<1x1xf32, #tpu.memory_space<vmem>>, vector<1x1xf32>,
    %c1_i32 = arith.constant 1 : i32
    %59 = arith.cmpi eq, %arg1, %c1_i32 : i32
    %60 = arith.extui %59 : i1 to i32
    %c0_i32_33 = arith.constant 0 : i32
    %61 = arith.cmpi ne, %60, %c0_i32_33 : i32
    scf.if %61 {
      %c0_34 = arith.constant 0 : index
      %c0_35 = arith.constant 0 : index
      %62 = vector.load %arg12[%c0_34, %c0_35] : memref<1x1xf32, #tpu.memory_space<vmem>>, vector<1x1xf32>
      %63 = vector.shape_cast %62 : vector<1x1xf32> to vector<1x1x1xf32>
      %64 = vector.broadcast %63 : vector<1x1x1xf32> to vector<1x8x128xf32>
      %c0_36 = arith.constant 0 : index
      %c0_37 = arith.constant 0 : index
      %c0_38 = arith.constant 0 : index
      %65 = vector.load %arg9[%c0_36, %c0_37, %c0_38] : memref<1x8x128xf32, #tpu.memory_space<vmem>>, vector<1x8x128xf32>
      tpu.vector_store %arg9[%c0_36, %c0_37, %c0_38], %64 {strides = array<i32>} : memref<1x8x128xf32, #tpu.memory_space<vmem>>, vector<1x8x128xf32>,
      %c0_39 = arith.constant 0 : index
      %c0_40 = arith.constant 0 : index
      %66 = vector.load %arg13[%c0_39, %c0_40] : memref<1x1xf32, #tpu.memory_space<vmem>>, vector<1x1xf32>
      %67 = vector.shape_cast %66 : vector<1x1xf32> to vector<1x1x1xf32>
      %68 = vector.broadcast %67 : vector<1x1x1xf32> to vector<1x8x128xf32>
      %c0_41 = arith.constant 0 : index
      %c0_42 = arith.constant 0 : index
      %c0_43 = arith.constant 0 : index
      %69 = vector.load %arg10[%c0_41, %c0_42, %c0_43] : memref<1x8x128xf32, #tpu.memory_space<vmem>>, vector<1x8x128xf32>
      tpu.vector_store %arg10[%c0_41, %c0_42, %c0_43], %68 {strides = array<i32>} : memref<1x8x128xf32, #tpu.memory_space<vmem>>, vector<1x8x128xf32>,
      %c0_44 = arith.constant 0 : index
      %c0_45 = arith.constant 0 : index
      %70 = vector.load %arg14[%c0_44, %c0_45] : memref<1x128xf32, #tpu.memory_space<vmem>>, vector<1x128xf32>
      %71 = vector.shape_cast %70 : vector<1x128xf32> to vector<1x1x128xf32>
      %72 = vector.broadcast %71 : vector<1x1x128xf32> to vector<1x8x128xf32>
      %c0_46 = arith.constant 0 : index
      %c0_47 = arith.constant 0 : index
      %c0_48 = arith.constant 0 : index
      %73 = vector.load %arg11[%c0_46, %c0_47, %c0_48] : memref<1x8x128xf32, #tpu.memory_space<vmem>>, vector<1x8x128xf32>
      tpu.vector_store %arg11[%c0_46, %c0_47, %c0_48], %72 {strides = array<i32>} : memref<1x8x128xf32, #tpu.memory_space<vmem>>, vector<1x8x128xf32>,
    } else {
    }
    return
  }
  func.func @transform_0(%arg0: i32, %arg1: i32) -> (i32, i32) {
    %c2_i32 = arith.constant 2 : i32
    %0 = arith.muli %arg0, %c2_i32 : i32
    %1 = arith.addi %0, %arg1 : i32
    %c3_i32 = arith.constant 3 : i32
    %2 = arith.minsi %1, %c3_i32 : i32
    %c0_i32 = arith.constant 0 : i32
    %c0_i32_0 = arith.constant 0 : i32
    return %2, %c0_i32 : i32, i32
  }
  func.func @transform_1(%arg0: i32, %arg1: i32) -> (i32, i32) {
    %c0_i32 = arith.constant 0 : i32
    %c0_i32_0 = arith.constant 0 : i32
    %c0_i32_1 = arith.constant 0 : i32
    return %c0_i32, %c0_i32_0 : i32, i32
  }
  func.func @transform_2(%arg0: i32, %arg1: i32) -> (i32, i32) {
    %c0_i32 = arith.constant 0 : i32
    %c0_i32_0 = arith.constant 0 : i32
    %c0_i32_1 = arith.constant 0 : i32
    return %c0_i32, %c0_i32_0 : i32, i32
  }
  func.func @transform_3(%arg0: i32, %arg1: i32) -> (i32, i32) {
    %c0_i32 = arith.constant 0 : i32
    %c0_i32_0 = arith.constant 0 : i32
    %c0_i32_1 = arith.constant 0 : i32
    return %c0_i32, %c0_i32_0 : i32, i32
  }
  func.func @transform_4(%arg0: i32, %arg1: i32) -> (i32, i32) {
    %c0_i32 = arith.constant 0 : i32
    %c0_i32_0 = arith.constant 0 : i32
    %c0_i32_1 = arith.constant 0 : i32
    return %c0_i32, %c0_i32_0 : i32, i32
  }
  func.func @transform_5(%arg0: i32, %arg1: i32) -> (i32, i32) {
    %c0_i32 = arith.constant 0 : i32
    %c0_i32_0 = arith.constant 0 : i32
    %c0_i32_1 = arith.constant 0 : i32
    return %c0_i32, %c0_i32_0 : i32, i32
  }
  func.func @transform_6(%arg0: i32, %arg1: i32) -> (i32, i32) {
    %c0_i32 = arith.constant 0 : i32
    %c0_i32_0 = arith.constant 0 : i32
    %c0_i32_1 = arith.constant 0 : i32
    return %c0_i32, %c0_i32_0 : i32, i32
  }
  func.func @transform_7(%arg0: i32, %arg1: i32) -> (i32, i32, i32) {
    %c0_i32 = arith.constant 0 : i32
    %c0_i32_0 = arith.constant 0 : i32
    %c0_i32_1 = arith.constant 0 : i32
    return %arg0, %c0_i32, %c0_i32_0 : i32, i32, i32
  }
  func.func @transform_8(%arg0: i32, %arg1: i32) -> (i32, i32, i32) {
    %c0_i32 = arith.constant 0 : i32
    %c0_i32_0 = arith.constant 0 : i32
    %c0_i32_1 = arith.constant 0 : i32
    return %arg0, %c0_i32, %c0_i32_0 : i32, i32, i32
  }
  func.func @transform_9(%arg0: i32, %arg1: i32) -> (i32, i32, i32) {
    %c0_i32 = arith.constant 0 : i32
    %c0_i32_0 = arith.constant 0 : i32
    %c0_i32_1 = arith.constant 0 : i32
    return %arg0, %c0_i32, %c0_i32_0 : i32, i32, i32
  }
}

</mosaic_0001>

<bundles_post_ra>
// kernel: tpu_custom_call.1
= control target key start
LH: loop header
LB: loop body
LE: loop exit
PB: predicated region body
PF: predicated region fallthrough
CT: control target
= control target key end

     0   :  { %s2910_s0 = inlined_call_operand.hbm [shape: f32[200,512], index: 0, kind: input, shape index: {}]   ;;  %s2911_s1 = inlined_call_operand.hbm [shape: f32[512,128], index: 1, kind: input, shape index: {}]   ;;  %s2912_s2 = inlined_call_operand.vmem [shape: f32[1,128], index: 2, kind: input, shape index: {}]   ;;  %s2913_s3 = inlined_call_operand.hbm [shape: f32[128,128], index: 3, kind: input, shape index: {}]   ;;  %s2914_s4 = inlined_call_operand.vmem [shape: f32[1,128], index: 4, kind: input, shape index: {}]   ;;  %s2915_s5 = inlined_call_operand.vmem [shape: f32[1,128], index: 5, kind: input, shape index: {}]   ;;  %s2916_s6 = inlined_call_operand.<no memory space> [shape: f32[1,1], index: 6, kind: input, shape index: {}]   ;;  %s2917_s7 = inlined_call_operand.hbm [shape: f32[2,8,128], index: 7, kind: output, shape index: {0}]   ;;  %s2918_s8 = inlined_call_operand.hbm [shape: f32[2,8,128], index: 8, kind: output, shape index: {1}]   ;;  %s2919_s9 = inlined_call_operand.hbm [shape: f32[2,8,128], index: 9, kind: output, shape index: {2}]  }
   0x1   :  { %2936 = sst [smem:[#allocation30_spill]] %s2917_s7  ;;  %v15_v0 = vstv %s2916_s6 }
   0x2   :  { %2937 = sst [smem:[#allocation31_spill]] %s2918_s8  ;;  %16 = vst [vmem:[#allocation5] sm:$0x1] %v15_v0 }
   0x3   :  { %2938 = sst [smem:[#allocation32_spill]] %s2919_s9 }
   0x4   :  { %17 = vsyncpa [#allocation7], 0 }
   0x5   :  { %19 = vsyncpa [#allocation7 + $0x1], 0 }
   0x6   :  { %20 = vsyncpa [#allocation10], 0 }
   0x7   :  { %21 = vsyncpa [#allocation8], 0 }
   0x8   :  { %23 = vsyncpa [#allocation8 + $0x1], 0 }
   0x9   :  { %24 = vsyncpa [#allocation14], 0 }
   0xa   :  { %26 = vsyncpa [#allocation14 + $0x1], 0  ;;  %s2355_s11 = smov 0   ;;  %s2357_s12 = smov 0  }
   0xb   :  { %s2359_s13 = smov 0   ;;  %s2361_s14 = smov 0  }
   0xc   :  { %s2363_s15 = smov 0   ;;  %s2365_s16 = smov 0  }
   0xd   :  { %s2367_s6 = smov 0   ;;  %s2369_s17 = smov 0  }
   0xe   :  { %s2371_s18 = smov 0   ;;  %s2373_s19 = smov 0  }
   0xf   :  { %s2375_s20 = smov 0  }
  0x10 LB: > { %2939 = sst [smem:[#allocation20_spill]] %s2243_s11  ;;  %s2411_s21 = sadd.s32 4294967295, %s2283_s20   ;;  %s2283_s20 = sphi %s2375_s20, %s32_s20   ;;  %s2279_s19 = sphi %s2373_s19, %s2976_s19   ;;  %s2275_s18 = sphi %s2371_s18, %s2983_s18   ;;  %s2271_s17 = sphi %s2369_s17, %s2974_s17   ;;  %s2267_s6 = sphi %s2367_s6, %s2982_s6   ;;  %s2263_s16 = sphi %s2365_s16, %s2981_s16   ;;  %s2259_s15 = sphi %s2363_s15, %s2980_s15   ;;  %s2255_s14 = sphi %s2361_s14, %s2979_s14   ;;  %s2251_s13 = sphi %s2359_s13, %s2971_s13   ;;  %s2247_s12 = sphi %s2357_s12, %s2978_s12   ;;  %s2243_s11 = sphi %s2355_s11, %s2977_s11  }
  0x11   : > { %2940 = sst [smem:[#allocation21_spill]] %s2251_s13  ;;  %s41_s23 = sadd.s32 1, %s2275_s18 }
  0x12   : > { %2941 = sst [smem:[#allocation22_spill]] %s2275_s18  ;;  %s44_s24 = sadd.s32 1, %s2279_s19 }
  0x13   : > { %2942 = sst [smem:[#allocation23_spill]] %s2279_s19  ;;  %p42_p0 = scmp.ge.s32.totalorder %s41_s23, 2 }
  0x14   : > { %s1456_s25 = sshll.u32 %s2279_s19, 1  ;;  %s59_s27 = sadd.s32 1, %s2263_s16 }
  0x15   : > { %s49_s26 = sadd.s32 %s2275_s18, %s1456_s25  ;;  %s2985_s23 = smov (%p42_p0, %s41_s23), 0 }
  0x16   : > { %2943 = sst [smem:[#allocation24_spill]] %s2985_s23  ;;  %s2987_s24 = smov (!%p42_p0, %s44_s24), %s2279_s19 }
  0x17   : > { %p50_p1 = scmp.lt.s32.totalorder %s49_s26, 3  ;;  %p66_p2 = scmp.ne.s32.totalorder %s2263_s16, %s2259_s15 }
  0x18   : > { %p46_p3 = scmp.ge.s32.totalorder %s2987_s24, 2  ;;  %p67_p4 = scmp.eq.s32.totalorder %s2283_s20, 0 }
  0x19   : > { %s2989_s26 = smov (!%p50_p1, %s49_s26), 3  ;;  %p72_p6 = scmp.ne.s32.totalorder %s2259_s15, %s2255_s14 }
  0x1a   : > { %s2991_s24 = smov (%p46_p3, %s2987_s24), 0  ;;  %p2429_p5 = por %p67_p4, %p66_p2 }
  0x1b   : > { %2944 = sst [smem:[#allocation25_spill]] %s2991_s24  ;;  %s1457_s29 = sshll.u32 %s2991_s24, 1 }
  0x1c   : > { %s2945_s28 = scalar_select %p2429_p5, 1, 0 }
  0x1d   : > { %p2928_p7 = scmp.eq.s32.totalorder %s2411_s21, 0  ;;  %s53_s30 = sadd.s32 %s1457_s29, %s2985_s23 }
  0x1e   : > { %s208_s10 = ssub.s32 %s2279_s19, %s2991_s24  ;;  %p54_p8 = scmp.lt.s32.totalorder %s53_s30, 3 }
  0x1f   : > { %p2442_p9 = por %p2928_p7, %p72_p6  ;;  %p209_p10 = scmp.eq.s32.totalorder %s208_s10, 0 }
  0x20   : > { %s211_s22 = sadd.s32 1, %s2251_s13  ;;  %s2993_s30 = smov (!%p54_p8, %s53_s30), 3 }
  0x21   : > { %s2946_s25 = scalar_select %p2442_p9, 1, 0 }
  0x22   : > { %s2448_s18 = scalar_select %p209_p10, %s2251_s13, %s211_s22  }
  0x23   : > { %s56_s14 = ssub.s32 %s2989_s26, %s2993_s30  ;;  %p221_p11 = scmp.ne.s32.totalorder %s2251_s13, %s2247_s12 }
  0x24   : > { %2947 = sst [smem:[#allocation26_spill]] %s2448_s18  ;;  %p57_p12 = scmp.eq.s32.totalorder %s56_s14, 0 }
  0x25   : > { %p222_p13 = scmp.eq.s32.totalorder %s2411_s21, 3  ;;  %p227_p0 = scmp.ne.s32.totalorder %s2247_s12, %s2243_s11 }
  0x26   : > { %s2948_s29 = sadd.s32 4294967294, %s2283_s20   ;;  %p1458_p4 = scmp.ge.s32.totalorder %s2283_s20, 1 }
  0x27   : > { %p228_p1 = scmp.eq.s32.totalorder %s2948_s29, 3  ;;  %p2461_p2 = por %p222_p13, %p221_p11 }
  0x28   : > { %s2459_s24 = scalar_select %p57_p12, %s2263_s16, %s59_s27  }
  0x29   : > { %s2950_s23 = scalar_select %p2461_p2, 1, 0 }
  0x2a   : > { %2949 = sst [smem:[#allocation27_spill]] %s2459_s24  ;;  %p2465_p3 = por %p228_p1, %p227_p0 }
  0x2b   : > { %2951 = sst [smem:[#allocation28_spill]] %s2950_s23  ;;  %p287_p6 = scmp.lt.s32.totalorder %s2283_s20, 5 }
  0x2c   : > { %s2952_s10 = scalar_select %p2465_p3, 1, 0 }
  0x2d   : > { %p2471_p8 = pnand %p1458_p4, %p287_p6  ;;  %s2285_s30 = smov [#allocation9]  }
  0x2e   : > { %2953 = sst [smem:[#allocation29_spill]] %s2952_s10  ;;  %s299_s14 = sshll.u32 %s2285_s30, 4  ;;  %s300_s14 = int_to_ptr.vmem [resolvable:$true] %s299_s14 }
  0x2f   : > { %s2954_s22 = scalar_select %p2471_p8, 1, 0 }
  0x30   : > { %p1853_p10 = pneg %p2471_p8  ;;  %s2286_s29 = smov [#allocation11]  }
  0x31   : > { %s315_s19 = sshll.u32 %s2286_s29, 4  ;;  %s2013_s13 = scalar_lea.hbm %s2911_s1, 8192  ;;  %s2483_s19 = int_to_ptr.vmem [resolvable:$true] %s315_s19 }
  0x32   : > { %p2479_p11 = pnand %p1853_p10, %p2928_p7  ;;  %p2014_p12 = scmp.ne.s32.totalorder %s2911_s1, %s2013_s13 }
  0x33   : > { %p2020_p4 = scmp.lt.u32.totalorder %s2013_s13, %s2911_s1 }
  0x34   : > { %p2015_p13 = pneg %p2479_p11 }
  0x36   : > { %p2016_p0 = pnand %p2015_p13, %p2014_p12 }
  0x38   : > { %p2017_p1 = pneg %p2016_p0 }
  0x3a   : > { %p2022_p6 = pnand %p2020_p4, %p2017_p1 }
  0x3c   : > { %2025 = shalt.err (!%p2022_p6)
}
  0x3d   : > { %s2026_s29 = scalar_lea.vmem %s300_s14, 8192  ;;  %p2034_p2 = scmp.lt.s32.totalorder %s300_s14, %s300_s14 }
  0x3e   : > { %p2027_p10 = scmp.ne.s32.totalorder %s300_s14, %s2026_s29  ;;  %p2035_p9 = scmp.lt.s32.totalorder %s2026_s29, %s2026_s29 }
  0x40   : > { %p2029_p7 = pnand %p2027_p10, %p2015_p13  ;;  %p2036_p8 = por %p2035_p9, %p2034_p2 }
  0x42   : > { %p2030_p3 = pneg %p2029_p7 }
  0x44   : > { %p2037_p5 = pnand %p2036_p8, %p2030_p3 }
  0x46   : > { %2040 = shalt.err (!%p2037_p5)
}
  0x47   : > { %s2287_s18 = smov 128   ;;  %s2288_s24 = smov 8  }
  0x48   : > { %1856 = dma.hbm_to_vmem [thread:$0]  (!%p2479_p11), %s2911_s1, 8192, %s300_s14, [#allocation10], %s2287_s18, %s2287_s18, %s2288_s24  }
  0x49   : > { %s2041_s30 = scalar_lea.hbm %s2913_s3, 2048 }
  0x4a   : > { %p2042_p7 = scmp.ne.s32.totalorder %s2913_s3, %s2041_s30  ;;  %p2048_p2 = scmp.lt.u32.totalorder %s2041_s30, %s2913_s3 }
  0x4c   : > { %p2044_p5 = pnand %p2042_p7, %p2015_p13 }
  0x4e   : > { %p2045_p9 = pneg %p2044_p5 }
  0x50   : > { %p2050_p3 = pnand %p2048_p2, %p2045_p9 }
  0x52   : > { %2053 = shalt.err (!%p2050_p3)
}
  0x53   : > { %s2054_s14 = scalar_lea.vmem %s2483_s19, 2048  ;;  %p2062_p1 = scmp.lt.s32.totalorder %s2483_s19, %s2483_s19 }
  0x54   : > { %p2055_p8 = scmp.ne.s32.totalorder %s2483_s19, %s2054_s14  ;;  %p2063_p4 = scmp.lt.s32.totalorder %s2054_s14, %s2054_s14 }
  0x56   : > { %p2057_p12 = pnand %p2055_p8, %p2015_p13  ;;  %p2064_p6 = por %p2063_p4, %p2062_p1 }
  0x58   : > { %p2058_p0 = pneg %p2057_p12 }
  0x5a   : > { %p2065_p10 = pnand %p2064_p6, %p2058_p0 }
  0x5c   : > { %2068 = shalt.err (!%p2065_p10)
}
  0x5d   : > { %1859 = dma.hbm_to_vmem [thread:$0]  (!%p2479_p11), %s2913_s3, 2048, %s2483_s19, [#allocation10], %s2287_s18, %s2287_s18, %s2288_s24  }
  0x5e   : > { %p1461_p7 = scmp.ge.s32.totalorder %s2283_s20, 4 }
  0x5f   : > { %p2956_p5 = scmp.ne.s32.totalorder (!%p1461_p7), %s2945_s28, 0 }
  0x60   : > { %334 = sbr.rel (%p1461_p7) target bundleno = 138 (0x8a), region = 40 }
  0x67   : > { %337 = sbr.rel (!%p2956_p5) target bundleno = 138 (0x8a), region = 44  ;;  %s338_s23 = sand.u32 (%p2956_p5), 1, %s2263_s16  }
  0x68   : > { %s1464_s9 = sshll.u32 (%p2956_p5), %s2989_s26, 3  ;;  %s1462_s11 = sshll.u32 (%p2956_p5), %s338_s23, 8 }
  0x69   : > { %s348_s13 = ssub.s32 (%p2956_p5), 25, %s1464_s9  ;;  %s2540_s30 = scalar_lea.sflag (%p2956_p5), [#allocation7], %s338_s23 }
  0x6a   : > { %p349_p13 = scmp.lt.s32.totalorder (%p2956_p5), %s348_s13, 8  ;;  %s342_s19 = scalar_lea.vmem (%p2956_p5), [#allocation6], %s1462_s11 }
  0x6e   : > { %s2995_s13 = smov (!%p349_p13, %s348_s13), 8 }
  0x6f   : > { %s2537_s27 = sshll.u32 %s2995_s13, 9 }
  0x70   : > { %s354_s10 = ssub.s32 4096, %s2537_s27 }
  0x71   : > { %355 = vsyncadd %s2540_s30, %s354_s10  ;;  %p1467_p11 = scmp.ne.s32.totalorder %s2537_s27, 0  ;;  %s1517_s28 = sshll.u32 %s2989_s26, 12 }
  0x72   : > { %s2548_s29 = scalar_lea.hbm %s2910_s0, %s1517_s28  ;;  %s361_s14 = sshll.u32 %s342_s19, 4  ;;  %s2550_s14 = int_to_ptr.vmem [resolvable:$true] %s361_s14 }
  0x73   : > { %s2069_s7 = scalar_lea.hbm %s2548_s29, %s2537_s27  ;;  %s2073_s26 = scalar_lea.hbm %s2910_s0, 12800 }
  0x74   : > { %p2070_p9 = scmp.ne.s32.totalorder %s2548_s29, %s2069_s7  ;;  %p2074_p8 = scmp.lt.u32.totalorder %s2548_s29, %s2910_s0 }
  0x75   : > { %p2075_p12 = scmp.lt.u32.totalorder %s2073_s26, %s2069_s7  ;;  %p2077_p1 = scmp.lt.u32.totalorder %s2069_s7, %s2548_s29 }
  0x76   : > { %p2071_p2 = pnand %p2070_p9, %p1467_p11 }
  0x77   : > { %p2076_p0 = por %p2075_p12, %p2074_p8 }
  0x78   : > { %p2072_p3 = pneg %p2071_p2 }
  0x79   : > { %p2078_p4 = por %p2077_p1, %p2076_p0 }
  0x7b   : > { %p2079_p6 = pnand %p2078_p4, %p2072_p3 }
  0x7d   : > { %2082 = shalt.err (!%p2079_p6)
}
  0x7e   : > { %s2083_s13 = scalar_lea.vmem %s2550_s14, %s2537_s27  ;;  %s2289_s10 = smov [#allocation6]  }
  0x7f   : > { %p2084_p10 = scmp.ne.s32.totalorder %s2550_s14, %s2083_s13  ;;  %s2087_s19 = sshll.u32 %s2289_s10, 4  ;;  %s2088_s19 = int_to_ptr.vmem [resolvable:$false] %s2087_s19 }
  0x80   : > { %s2089_s28 = scalar_lea.vmem %s2088_s19, 8192  ;;  %p2090_p13 = scmp.lt.s32.totalorder %s2550_s14, %s2088_s19 }
  0x81   : > { %p2085_p7 = pnand %p2084_p10, %p1467_p11  ;;  %p2091_p9 = scmp.lt.s32.totalorder %s2089_s28, %s2083_s13 }
  0x83   : > { %p2086_p5 = pneg %p2085_p7  ;;  %p2092_p2 = por %p2091_p9, %p2090_p13 }
  0x85   : > { %p2093_p8 = pnand %p2092_p2, %p2086_p5 }
  0x87   : > { %2096 = shalt.err (!%p2093_p8)
}
  0x88   : > { %s2290_s18 = smov 512   ;;  %s2291_s24 = smov 32  }
  0x89   : > { %367 = dma.hbm_to_vmem [thread:$0]  (%p1467_p11), %s2548_s29, %s2537_s27, %s2550_s14, %s2540_s30, %s2290_s18, %s2290_s18, %s2291_s24  }
  0x8a PF: > { %p2957_p3 = scmp.ne.s32.totalorder %s2954_s22, 0 }
  0x8b   : > { %s375_s7 = sand.u32 (!%p2957_p3), 1, %s2259_s15   ;;  %p2958_p12 = scmp.ne.s32.totalorder (!%p2957_p3), %s2946_s25, 0 }
  0x8c   : > { %373 = sbr.rel (%p2957_p3) target bundleno = 1281 (0x501), region = 48  ;;  %s1473_s8 = sshll.u32 (!%p2957_p3), %s375_s7, 8 }
  0x8d   : > { %s376_s23 = scalar_lea.sflag (!%p2957_p3), [#allocation7], %s375_s7  ;;  %s2580_s26 = scalar_lea.vmem (!%p2957_p3), [#allocation6], %s1473_s8 }
  0x93   : > { %2226 = dma.done.wait (%p2958_p12), %s376_s23, 4096  }
  0x94   : > { %2228 = vsyncadd (%p2958_p12), %s376_s23, 4294963200  ;;  %p2959_p0 = scmp.eq.s32.totalorder %s2411_s21, 0 }
  0x96   : > { %2230 = dma.done.wait (%p2959_p0), [#allocation10], 10240   ;;  %p2960_p11 = pmov %p2959_p0 }
  0x97   : > { %s415_s22 = sand.u32 1, %s2247_s12   ;;  %p1479_p1 = scmp.ne.s32.totalorder %s2267_s6, 0 }
  0x98   : > { %2232 = vsyncadd (%p2960_p11), [#allocation10], 4294957056  ;;  %s2593_s27 = sshll.u32 %s415_s22, 3  ;;  %vm446_vm0 = vcmask (!%p1479_p1), 0   ;;  %v2292_v1 = vmov (!%p1479_p1), -1e+30  }
  0x99   : > { %s417_s30 = scalar_lea.vmem [#allocation12], %s2593_s27  ;;  %s424_s29 = scalar_lea.vmem [#allocation13], %s2593_s27  ;;  %447 = vst.msk [vmem:[#allocation2] sm:$0x1] (!%p1479_p1), %vm446_vm0, %v2292_v1  ;;  %v2293_v2 = vmov (!%p1479_p1), 0.0  }
  0x9a   : > { %s431_s14 = scalar_lea.vmem [#allocation15], %s2593_s27  ;;  %445 = sbr.rel (%p1479_p1) target bundleno = 161 (0xa1), region = 64  ;;  %448 = vst.msk [vmem:[#allocation3] sm:$0x1] (!%p1479_p1), %vm446_vm0, %v2293_v2  ;;  %449 = vst [vmem:[#allocation4] sm:$0x1] (!%p1479_p1), %v2293_v2 }
  0xa1 PF: > { %v527_v3 = vld [vmem:[#allocation9 + $0x80] sm:$0xff]  ;;  %v528_v4 = vld [vmem:[#allocation9 + $0x88] sm:$0xff]  ;;  %v529_v14 = vld [vmem:[#allocation9 + $0x90] sm:$0xff]  ;;  %s2633_s25 = sshll.u32 %s2271_s17, 7  ;;  %s1481_s9 = sshll.u32 %s2267_s6, 6  ;;  %vm1007_vm13 = vcmask 7168  }
  0xa2   : > { %v511_v5 = vld [vmem:[#allocation9] sm:$0xff]  ;;  %v1726_v6 = vpack.c.bf16 %v528_v4, %v527_v3  ;;  %v512_v7 = vld [vmem:[#allocation9 + $0x8] sm:$0xff]  ;;  %v530_v16 = vld [vmem:[#allocation9 + $0x98] sm:$0xff]  ;;  %s452_s11 = sadd.s32 %s1481_s9, %s2633_s25  ;;  %vm1087_vm14 = vcmask 0   ;;  %vm2296_vm15 = vmmov 0   ;;  %vm1132_vm0 = vcmask 523264  }
  0xa3   : > { %v559_v8 = vld [vmem:[#allocation9 + $0x180] sm:$0xff]  ;;  %v560_v9 = vld [vmem:[#allocation9 + $0x188] sm:$0xff]  ;;  %v1728_v10 = vpack.c.bf16 %v512_v7, %v511_v5  ;;  %v513_v17 = vld [vmem:[#allocation9 + $0x10] sm:$0xff]  ;;  %v1730_v19 = vpack.c.bf16 %v530_v16, %v529_v14  ;;  %p1503_p4 = scmp.ne.s32.totalorder %s2267_s6, 1 }
  0xa4   : > { %v1758_v11 = vpack.c.bf16 %v560_v9, %v559_v8  ;;  %v543_v12 = vld [vmem:[#allocation9 + $0x100] sm:$0xff]  ;;  %v544_v13 = vld [vmem:[#allocation9 + $0x108] sm:$0xff]  ;;  %1727 = vmatprep.subr.bf16.mxu0 %v1726_v6  ;;  %v514_v18 = vld [vmem:[#allocation9 + $0x18] sm:$0xff] }
  0xa5   : > { %v1760_v15 = vpack.c.bf16 %v544_v13, %v543_v12  ;;  %1729 = vmatpush3.bf16.msra.mxu0 %v1728_v10  ;;  %v1732_v20 = vpack.c.bf16 %v514_v18, %v513_v17  ;;  %v561_v21 = vld [vmem:[#allocation9 + $0x190] sm:$0xff]  ;;  %v562_v22 = vld [vmem:[#allocation9 + $0x198] sm:$0xff]  ;;  %v531_v26 = vld [vmem:[#allocation9 + $0xa0] sm:$0xff] }
  0xa6   : > { %1759 = vmatprep.subr.bf16.mxu1 %v1758_v11  ;;  %v545_v23 = vld [vmem:[#allocation9 + $0x110] sm:$0xff]  ;;  %v1762_v24 = vpack.c.bf16 %v562_v22, %v561_v21  ;;  %v546_v25 = vld [vmem:[#allocation9 + $0x118] sm:$0xff]  ;;  %v532_v27 = vld [vmem:[#allocation9 + $0xa8] sm:$0xff]  ;;  %1731 = vmatprep.subr.bf16.mxu0 %v1730_v19 }
  0xa7   : > { %1761 = vmatpush3.bf16.msra.mxu1 %v1760_v15  ;;  %v1764_v28 = vpack.c.bf16 %v546_v25, %v545_v23  ;;  %v1734_v29 = vpack.c.bf16 %v532_v27, %v531_v26  ;;  %v515_v30 = vld [vmem:[#allocation9 + $0x20] sm:$0xff]  ;;  %v516_v31 = vld [vmem:[#allocation9 + $0x28] sm:$0xff]  ;;  %v533_v38 = vld [vmem:[#allocation9 + $0xb0] sm:$0xff] }
  0xa8   : > { %v563_v32 = vld [vmem:[#allocation9 + $0x1a0] sm:$0xff]  ;;  %1763 = vmatprep.subr.bf16.mxu1 %v1762_v24  ;;  %v564_v33 = vld [vmem:[#allocation9 + $0x1a8] sm:$0xff]  ;;  %v1736_v36 = vpack.c.bf16 %v516_v31, %v515_v30  ;;  %v534_v39 = vld [vmem:[#allocation9 + $0xb8] sm:$0xff] }
  0xa9   : > { %v547_v34 = vld [vmem:[#allocation9 + $0x120] sm:$0xff]  ;;  %v548_v35 = vld [vmem:[#allocation9 + $0x128] sm:$0xff]  ;;  %1733 = vmatpush3.bf16.msra.mxu0 %v1732_v20  ;;  %v1766_v37 = vpack.c.bf16 %v564_v33, %v563_v32  ;;  %v517_v40 = vld [vmem:[#allocation9 + $0x30] sm:$0xff]  ;;  %v1738_v42 = vpack.c.bf16 %v534_v39, %v533_v38 }
  0xaa   : > { %1735 = vmatprep.subr.bf16.mxu0 %v1734_v29  ;;  %v1768_v41 = vpack.c.bf16 %v548_v35, %v547_v34  ;;  %v518_v43 = vld [vmem:[#allocation9 + $0x38] sm:$0xff]  ;;  %v565_v44 = vld [vmem:[#allocation9 + $0x1b0] sm:$0xff]  ;;  %v535_v49 = vld [vmem:[#allocation9 + $0xc0] sm:$0xff] }
  0xab   : > { %1765 = vmatpush3.bf16.msra.mxu1 %v1764_v28  ;;  %v566_v45 = vld [vmem:[#allocation9 + $0x1b8] sm:$0xff]  ;;  %v549_v47 = vld [vmem:[#allocation9 + $0x130] sm:$0xff]  ;;  %v536_v50 = vld [vmem:[#allocation9 + $0xc8] sm:$0xff]  ;;  %v1740_v51 = vpack.c.bf16 %v518_v43, %v517_v40 }
  0xac   : > { %1767 = vmatprep.subr.bf16.mxu1 %v1766_v37  ;;  %v1770_v46 = vpack.c.bf16 %v566_v45, %v565_v44  ;;  %v550_v48 = vld [vmem:[#allocation9 + $0x138] sm:$0xff]  ;;  %v567_v52 = vld [vmem:[#allocation9 + $0x1c0] sm:$0xff]  ;;  %v568_v53 = vld [vmem:[#allocation9 + $0x1c8] sm:$0xff]  ;;  %v1742_v55 = vpack.c.bf16 %v536_v50, %v535_v49 }
  0xad   : > { %1737 = vmatpush3.bf16.msra.mxu0 %v1736_v36  ;;  %v1772_v54 = vpack.c.bf16 %v550_v48, %v549_v47  ;;  %v519_v56 = vld [vmem:[#allocation9 + $0x40] sm:$0xff]  ;;  %v520_v57 = vld [vmem:[#allocation9 + $0x48] sm:$0xff]  ;;  %v1774_v59 = vpack.c.bf16 %v568_v53, %v567_v52  ;;  %v537_v61 = vld [vmem:[#allocation9 + $0xd0] sm:$0xff] }
  0xae   : > { %1739 = vmatprep.subr.bf16.mxu0 %v1738_v42  ;;  %v551_v58 = vld [vmem:[#allocation9 + $0x140] sm:$0xff]  ;;  %v552_v60 = vld [vmem:[#allocation9 + $0x148] sm:$0xff]  ;;  %v538_v62 = vld [vmem:[#allocation9 + $0xd8] sm:$0xff]  ;;  %v1744_v1 = vpack.c.bf16 %v520_v57, %v519_v56 }
  0xaf   : > { %1769 = vmatpush3.bf16.msra.mxu1 %v1768_v41  ;;  %v569_v63 = vld [vmem:[#allocation9 + $0x1d0] sm:$0xff]  ;;  %v570_v0 = vld [vmem:[#allocation9 + $0x1d8] sm:$0xff]  ;;  %v1776_v2 = vpack.c.bf16 %v552_v60, %v551_v58  ;;  %v1746_v3 = vpack.c.bf16 %v538_v62, %v537_v61  ;;  %v539_v9 = vld [vmem:[#allocation9 + $0xe0] sm:$0xff] }
  0xb0   : > { %1771 = vmatprep.subr.bf16.mxu1 %v1770_v46  ;;  %v521_v4 = vld [vmem:[#allocation9 + $0x50] sm:$0xff]  ;;  %v522_v5 = vld [vmem:[#allocation9 + $0x58] sm:$0xff]  ;;  %v1778_v7 = vpack.c.bf16 %v570_v0, %v569_v63  ;;  %v540_v10 = vld [vmem:[#allocation9 + $0xe8] sm:$0xff] }
  0xb1   : > { %1741 = vmatpush3.bf16.msra.mxu0 %v1740_v51  ;;  %v553_v6 = vld [vmem:[#allocation9 + $0x150] sm:$0xff]  ;;  %v554_v8 = vld [vmem:[#allocation9 + $0x158] sm:$0xff]  ;;  %v571_v11 = vld [vmem:[#allocation9 + $0x1e0] sm:$0xff]  ;;  %v1748_v13 = vpack.c.bf16 %v522_v5, %v521_v4  ;;  %v1750_v17 = vpack.c.bf16 %v540_v10, %v539_v9 }
  0xb2   : > { %1743 = vmatprep.subr.bf16.mxu0 %v1742_v55  ;;  %v572_v12 = vld [vmem:[#allocation9 + $0x1e8] sm:$0xff]  ;;  %v523_v14 = vld [vmem:[#allocation9 + $0x60] sm:$0xff]  ;;  %v1780_v16 = vpack.c.bf16 %v554_v8, %v553_v6  ;;  %v541_v22 = vld [vmem:[#allocation9 + $0xf0] sm:$0xff] }
  0xb3   : > { %1773 = vmatpush3.bf16.msra.mxu1 %v1772_v54  ;;  %v524_v15 = vld [vmem:[#allocation9 + $0x68] sm:$0xff]  ;;  %v555_v18 = vld [vmem:[#allocation9 + $0x160] sm:$0xff]  ;;  %v1782_v21 = vpack.c.bf16 %v572_v12, %v571_v11  ;;  %v542_v23 = vld [vmem:[#allocation9 + $0xf8] sm:$0xff] }
  0xb4   : > { %1775 = vmatprep.subr.bf16.mxu1 %v1774_v59  ;;  %v556_v19 = vld [vmem:[#allocation9 + $0x168] sm:$0xff]  ;;  %v482_v24 = vld [vmem:[%s2580_s26 + $0x18] sm:$0xff]  ;;  %v573_v25 = vld [vmem:[#allocation9 + $0x1f0] sm:$0xff]  ;;  %v1752_v27 = vpack.c.bf16 %v524_v15, %v523_v14  ;;  %v1754_v29 = vpack.c.bf16 %v542_v23, %v541_v22 }
  0xb5   : > { %1745 = vmatpush3.bf16.msra.mxu0 %v1744_v1  ;;  %v480_v20 = vld [vmem:[%s2580_s26 + $0x8] sm:$0xff]  ;;  %v574_v26 = vld [vmem:[#allocation9 + $0x1f8] sm:$0xff]  ;;  %751 = vmatprep.mubr.f32.mxu1 %v482_v24  ;;  %v1784_v28 = vpack.c.bf16 %v556_v19, %v555_v18  ;;  %v525_v30 = vld [vmem:[#allocation9 + $0x70] sm:$0xff] }
  0xb6   : > { %1747 = vmatprep.subr.bf16.mxu0 %v1746_v3  ;;  %646 = vmatprep.mubr.f32.mxu0 %v480_v20  ;;  %v526_v31 = vld [vmem:[#allocation9 + $0x78] sm:$0xff]  ;;  %v1786_v32 = vpack.c.bf16 %v574_v26, %v573_v25  ;;  %v557_v33 = vld [vmem:[#allocation9 + $0x170] sm:$0xff]  ;;  %v479_v37 = vld [vmem:[%s2580_s26] sm:$0xff] }
  0xb7   : > { %1777 = vmatpush3.bf16.msra.mxu1 %v1776_v2  ;;  %v558_v34 = vld [vmem:[#allocation9 + $0x178] sm:$0xff]  ;;  %v1756_v35 = vpack.c.bf16 %v526_v31, %v525_v30  ;;  %v816_v38 = vld [vmem:[#allocation11] sm:$0xff]  ;;  %v817_v39 = vld [vmem:[#allocation11 + $0x8] sm:$0xff]  ;;  %v2639_v30 = vstv %s452_s11 }
  0xb8   : > { %1779 = vmatprep.subr.bf16.mxu1 %v1778_v7  ;;  %v1788_v36 = vpack.c.bf16 %v558_v34, %v557_v33  ;;  %v818_v40 = vld [vmem:[#allocation11 + $0x10] sm:$0xff]  ;;  %v484_v42 = vld [vmem:[%s2580_s26 + $0x28] sm:$0xff]  ;;  %v1790_v43 = vpack.c.bf16 %v817_v39, %v816_v38  ;;  %v819_v44 = vld [vmem:[#allocation11 + $0x18] sm:$0xff] }
  0xb9   : > { %1749 = vmatpush3.bf16.msra.mxu0 %v1748_v13  ;;  %v481_v41 = vld [vmem:[%s2580_s26 + $0x10] sm:$0xff]  ;;  %v486_v45 = vld [vmem:[%s2580_s26 + $0x38] sm:$0xff]  ;;  %v1794_v46 = vpack.c.bf16 %v819_v44, %v818_v40  ;;  %v820_v47 = vld [vmem:[#allocation11 + $0x20] sm:$0xff] }
  0xba   : > { %1751 = vmatprep.subr.bf16.mxu0 %v1750_v17  ;;  %v821_v48 = vld [vmem:[#allocation11 + $0x28] sm:$0xff]  ;;  %v483_v49 = vld [vmem:[%s2580_s26 + $0x20] sm:$0xff]  ;;  %v485_v50 = vld [vmem:[%s2580_s26 + $0x30] sm:$0xff] }
  0xbb   : > { %1781 = vmatpush3.bf16.msra.mxu1 %v1780_v16  ;;  %v488_v51 = vld [vmem:[%s2580_s26 + $0x48] sm:$0xff]  ;;  %v490_v52 = vld [vmem:[%s2580_s26 + $0x58] sm:$0xff]  ;;  %v1798_v53 = vpack.c.bf16 %v821_v48, %v820_v47  ;;  %v822_v54 = vld [vmem:[#allocation11 + $0x30] sm:$0xff] }
  0xbc   : > { %1783 = vmatprep.subr.bf16.mxu1 %v1782_v21  ;;  %v823_v55 = vld [vmem:[#allocation11 + $0x38] sm:$0xff]  ;;  %v487_v56 = vld [vmem:[%s2580_s26 + $0x40] sm:$0xff]  ;;  %v489_v57 = vld [vmem:[%s2580_s26 + $0x50] sm:$0xff] }
  0xbd   : > { %1753 = vmatpush3.bf16.msra.mxu0 %v1752_v27  ;;  %v492_v58 = vld [vmem:[%s2580_s26 + $0x68] sm:$0xff]  ;;  %v494_v59 = vld [vmem:[%s2580_s26 + $0x78] sm:$0xff]  ;;  %v1802_v60 = vpack.c.bf16 %v823_v55, %v822_v54  ;;  %v824_v61 = vld [vmem:[#allocation11 + $0x40] sm:$0xff]  ;;  %v2294_v27 = vmov 0.0|0.0  }
  0xbe   : > { %1755 = vmatprep.subr.bf16.mxu0 %v1754_v29  ;;  %v825_v62 = vld [vmem:[#allocation11 + $0x48] sm:$0xff]  ;;  %v491_v63 = vld [vmem:[%s2580_s26 + $0x60] sm:$0xff]  ;;  %v493_v0 = vld [vmem:[%s2580_s26 + $0x70] sm:$0xff] }
  0xbf   : > { %1785 = vmatpush3.bf16.msra.mxu1 %v1784_v28  ;;  %v496_v1 = vld [vmem:[%s2580_s26 + $0x88] sm:$0xff]  ;;  %v498_v2 = vld [vmem:[%s2580_s26 + $0x98] sm:$0xff]  ;;  %v1806_v3 = vpack.c.bf16 %v825_v62, %v824_v61  ;;  %v495_v4 = vld [vmem:[%s2580_s26 + $0x80] sm:$0xff]  ;;  %v453_v28 = vlaneseq }
  0xc0   : > { %1787 = vmatprep.subr.bf16.mxu1 %v1786_v32  ;;  %v497_v5 = vld [vmem:[%s2580_s26 + $0x90] sm:$0xff]  ;;  %v500_v6 = vld [vmem:[%s2580_s26 + $0xa8] sm:$0xff]  ;;  %v502_v7 = vld [vmem:[%s2580_s26 + $0xb8] sm:$0xff] }
  0xc1   : > { %1757 = vmatpush3.bf16.msra.mxu0 %v1756_v35  ;;  %v499_v8 = vld [vmem:[%s2580_s26 + $0xa0] sm:$0xff]  ;;  %v501_v9 = vld [vmem:[%s2580_s26 + $0xb0] sm:$0xff]  ;;  %v504_v10 = vld [vmem:[%s2580_s26 + $0xc8] sm:$0xff]  ;;  %v2637_v29 = vshrl.u32 %v453_v28, 7 }
  0xc2   : > { %1791 = vmatprep.subr.bf16.mxu0 %v1790_v43  ;;  %v506_v11 = vld [vmem:[%s2580_s26 + $0xd8] sm:$0xff]  ;;  %v503_v12 = vld [vmem:[%s2580_s26 + $0xc0] sm:$0xff]  ;;  %v505_v13 = vld [vmem:[%s2580_s26 + $0xd0] sm:$0xff] }
  0xc3   : > { %1789 = vmatpush3.bf16.msra.mxu1 %v1788_v36  ;;  %v508_v14 = vld [vmem:[%s2580_s26 + $0xe8] sm:$0xff]  ;;  %v510_v15 = vld [vmem:[%s2580_s26 + $0xf8] sm:$0xff]  ;;  %v507_v16 = vld [vmem:[%s2580_s26 + $0xe0] sm:$0xff]  ;;  %v455_v32 = vadd.s32 8, %v2637_v29  ;;  %v2649_v36 = vadd.s32 %v2639_v30, %v2637_v29 }
  0xc4   : > { %647 = vmatmul.mubr.f32.vlgmr.msra.gmra.mrb[0].mxu0 %v479_v37  ;;  %v509_v17 = vld [vmem:[%s2580_s26 + $0xf0] sm:$0xff]  ;;  %v827_v19 = vld [vmem:[#allocation11 + $0x58] sm:$0xff]  ;;  %v828_v21 = vld [vmem:[#allocation11 + $0x60] sm:$0xff]  ;;  %1822 = vmatprep.subr.bf16.mxu1 %v2294_v27 }
  0xc5   : > { %651 = vmatprep.mubr.f32.mxu0 %v484_v42  ;;  %1793 = vmatpush3.bf16.msra.mxu0 %v1790_v43  ;;  %v826_v18 = vld [vmem:[#allocation11 + $0x50] sm:$0xff]  ;;  %v829_v22 = vld [vmem:[#allocation11 + $0x68] sm:$0xff]  ;;  %v831_v25 = vld [vmem:[#allocation11 + $0x78] sm:$0xff]  ;;  %v2653_v42 = vadd.s32 %v2639_v30, %v455_v32  ;;  %vm471_vm1 = vcmp.lt.s32.totalorder %v2649_v36, 200 }
  0xc6   : > { %752 = vmatmul.mubr.f32.vlgmr.msra.gmra.mrb[0].mxu1 %v481_v41  ;;  %1795 = vmatprep.subr.bf16.mxu0 %v1794_v46  ;;  %v1810_v20 = vpack.c.bf16 %v827_v19, %v826_v18  ;;  %v1814_v23 = vpack.c.bf16 %v829_v22, %v828_v21  ;;  %v830_v24 = vld [vmem:[#allocation11 + $0x70] sm:$0xff]  ;;  %v2645_v33 = vld [vmem:[%s2912_s2] ss:$0 sm:$0xff] }
  0xc7   : > { %756 = vmatprep.mubr.f32.mxu1 %v486_v45  ;;  %v1818_v26 = vpack.c.bf16 %v831_v25, %v830_v24  ;;  %v456_v45 = vadd.s32 16, %v2637_v29  ;;  %vm472_vm2 = vcmp.lt.s32.totalorder %v2653_v42, 200 }
  0xc8   : > { %652 = vmatmul.mubr.f32.gmra.mrb[2].mxu0 %v483_v49  ;;  %vm1824_vm3 = vmpackc.low %vm472_vm2, %vm471_vm1 }
  0xc9   : > { %656 = vmatprep.mubr.f32.mxu0 %v488_v51  ;;  %1797 = vmatpush3.bf16.msra.mxu0 %v1794_v46  ;;  %v2663_v55 = vadd.s32 %v2639_v30, %v456_v45 }
  0xca   : > { %757 = vmatmul.mubr.f32.gmra.mrb[2].mxu1 %v485_v50  ;;  %1799 = vmatprep.subr.bf16.mxu0 %v1798_v53 }
  0xcb   : > { %761 = vmatprep.mubr.f32.mxu1 %v490_v52  ;;  %v457_v52 = vadd.s32 24, %v2637_v29  ;;  %vm473_vm4 = vcmp.lt.s32.totalorder %v2663_v55, 200 }
  0xcc   : > { %657 = vmatmul.mubr.f32.gmra.mrb[4].mxu0 %v487_v56 }
  0xcd   : > { %661 = vmatprep.mubr.f32.mxu0 %v492_v58  ;;  %1801 = vmatpush3.bf16.msra.mxu0 %v1798_v53 }
  0xce   : > { %762 = vmatmul.mubr.f32.gmra.mrb[4].mxu1 %v489_v57  ;;  %1803 = vmatprep.subr.bf16.mxu0 %v1802_v60 }
  0xcf   : > { %766 = vmatprep.mubr.f32.mxu1 %v494_v59 }
  0xd0   : > { %662 = vmatmul.mubr.f32.gmra.mrb[6].mxu0 %v491_v63  ;;  %v2673_v63 = vadd.s32 %v2639_v30, %v457_v52 }
  0xd1   : > { %666 = vmatprep.mubr.f32.mxu0 %v496_v1  ;;  %1805 = vmatpush3.bf16.msra.mxu0 %v1802_v60 }
  0xd2   : > { %767 = vmatmul.mubr.f32.gmra.mrb[6].mxu1 %v493_v0  ;;  %1807 = vmatprep.subr.bf16.mxu0 %v1806_v3  ;;  %vm474_vm5 = vcmp.lt.s32.totalorder %v2673_v63, 200 }
  0xd3   : > { %771 = vmatprep.mubr.f32.mxu1 %v498_v2  ;;  %v458_v2 = vadd.s32 32, %v2637_v29  ;;  %vm1828_vm6 = vmpackc.low %vm474_vm5, %vm473_vm4 }
  0xd4   : > { %667 = vmatmul.mubr.f32.gmra.mrb[8].mxu0 %v495_v4 }
  0xd5   : > { %671 = vmatprep.mubr.f32.mxu0 %v500_v6  ;;  %1809 = vmatpush3.bf16.msra.mxu0 %v1806_v3 }
  0xd6   : > { %772 = vmatmul.mubr.f32.gmra.mrb[8].mxu1 %v497_v5  ;;  %1811 = vmatprep.subr.bf16.mxu0 %v1810_v20 }
  0xd7   : > { %776 = vmatprep.mubr.f32.mxu1 %v502_v7 }
  0xd8   : > { %672 = vmatmul.mubr.f32.gmra.mrb[10].mxu0 %v499_v8 }
  0xd9   : > { %676 = vmatprep.mubr.f32.mxu0 %v504_v10  ;;  %1813 = vmatpush3.bf16.msra.mxu0 %v1810_v20 }
  0xda   : > { %777 = vmatmul.mubr.f32.gmra.mrb[10].mxu1 %v501_v9  ;;  %1815 = vmatprep.subr.bf16.mxu0 %v1814_v23  ;;  %v459_v9 = vadd.s32 40, %v2637_v29 }
  0xdb   : > { %781 = vmatprep.mubr.f32.mxu1 %v506_v11 }
  0xdc   : > { %677 = vmatmul.mubr.f32.gmra.mrb[12].mxu0 %v503_v12  ;;  %v2684_v12 = vadd.s32 %v2639_v30, %v458_v2  ;;  %v2694_v20 = vadd.s32 %v2639_v30, %v459_v9 }
  0xdd   : > { %681 = vmatprep.mubr.f32.mxu0 %v508_v14  ;;  %1817 = vmatpush3.bf16.msra.mxu0 %v1814_v23  ;;  %v460_v23 = vadd.s32 48, %v2637_v29 }
  0xde   : > { %782 = vmatmul.mubr.f32.gmra.mrb[12].mxu1 %v505_v13  ;;  %1819 = vmatprep.subr.bf16.mxu0 %v1818_v26  ;;  %vm475_vm7 = vcmp.lt.s32.totalorder %v2684_v12, 200  ;;  %vm476_vm8 = vcmp.lt.s32.totalorder %v2694_v20, 200 }
  0xdf   : > { %786 = vmatprep.mubr.f32.mxu1 %v510_v15  ;;  %vm1832_vm9 = vmpackc.low %vm476_vm8, %vm475_vm7 }
  0xe0   : > { %682 = vmatmul.mubr.f32.gmra.mrb[14].mxu0 %v507_v16 }
  0xe1   : > { %1821 = vmatpush3.bf16.msra.mxu0 %v1818_v26 }
  0xe2   : > { %787 = vmatmul.mubr.f32.gmra.mrb[14].mxu1 %v509_v17 }
 0x197   : > { %v1550_v31 = vpop.f32.mrb[0].mxu0 }
 0x198   : > { %v1551_v34 = vpop.f32.mrb[1].mxu0 }
 0x199   : > { %v1606_v35 = vpop.f32.mrb[0].mxu1  ;;  %v1552_v37 = vadd.f32 %v1551_v34, %v1550_v31  ;;  %v461_v34 = vadd.s32 56, %v2637_v29 }
 0x19a   : > { %v1607_v38 = vpop.f32.mrb[1].mxu1 }
 0x19b   : > { %v1608_v39 = vadd.f32 %v1607_v38, %v1606_v35  ;;  %v649_v40 = vadd.f32 %v1552_v37, %v2645_v33  ;;  %v1553_v41 = vpop.f32.mrb[2].mxu0  ;;  %v2705_v38 = vadd.s32 %v2639_v30, %v460_v23 }
 0x19c   : > { %v1554_v43 = vpop.f32.mrb[3].mxu0 }
 0x19d   : > { %v1609_v44 = vpop.f32.mrb[2].mxu1  ;;  %v754_v46 = vadd.f32 %v1608_v39, %v649_v40  ;;  %v1555_v47 = vadd.f32 %v1554_v43, %v1553_v41  ;;  %vm477_vm10 = vcmp.lt.s32.totalorder %v2705_v38, 200 }
 0x19e   : > { %v1610_v48 = vpop.f32.mrb[3].mxu1 }
 0x19f   : > { %v1611_v49 = vadd.f32 %v1610_v48, %v1609_v44  ;;  %v654_v50 = vadd.f32 %v1555_v47, %v2645_v33  ;;  %v1556_v51 = vpop.f32.mrb[4].mxu0  ;;  %1695 = vmatprep.mubr.msk.f32.mxu0 %vm471_vm1, %v754_v46  ;;  %v2715_v47 = vadd.s32 %v2639_v30, %v461_v34 }
 0x1a0   : > { %v1557_v53 = vpop.f32.mrb[5].mxu0 }
 0x1a1   : > { %v1612_v54 = vpop.f32.mrb[4].mxu1  ;;  %v759_v56 = vadd.f32 %v1611_v49, %v654_v50  ;;  %v1558_v57 = vadd.f32 %v1557_v53, %v1556_v51  ;;  %vm478_vm11 = vcmp.lt.s32.totalorder %v2715_v47, 200 }
 0x1a2   : > { %v1613_v58 = vpop.f32.mrb[5].mxu1  ;;  %vm1836_vm12 = vmpackc.low %vm478_vm11, %vm477_vm10 }
 0x1a3   : > { %v1614_v59 = vadd.f32 %v1613_v58, %v1612_v54  ;;  %v1823_v60 = vpack.c.bf16 %v759_v56, %v754_v46  ;;  %v659_v61 = vadd.f32 %v1558_v57, %v2645_v33  ;;  %v1559_v62 = vpop.f32.mrb[6].mxu0  ;;  %1696 = vmatmul.mubr.msk.f32.vlgmr.msra.gmra.mrb[16].mxu0 %vm472_vm2, %v759_v56 }
 0x1a4   : > { %v1560_v0 = vpop.f32.mrb[7].mxu0 }
 0x1a5   : > { %v1615_v1 = vpop.f32.mrb[6].mxu1  ;;  %v764_v3 = vadd.f32 %v1614_v59, %v659_v61  ;;  %v1561_v4 = vadd.f32 %v1560_v0, %v1559_v62  ;;  %1825 = vmatpush3.bf16.msk.msra.mxu1 %vm1824_vm3, %v1823_v60 }
 0x1a6   : > { %v1616_v5 = vpop.f32.mrb[7].mxu1  ;;  %1826 = vmatprep.subr.bf16.mxu1 %v2294_v27 }
 0x1a7   : > { %v1617_v6 = vadd.f32 %v1616_v5, %v1615_v1  ;;  %v664_v7 = vadd.f32 %v1561_v4, %v2645_v33  ;;  %v1562_v8 = vpop.f32.mrb[8].mxu0  ;;  %1698 = vmatprep.mubr.msk.f32.mxu0 %vm473_vm4, %v764_v3  ;;  %v1492_v1 = vld [vmem:[%s2915_s5] ss:$0 sm:$0xff] }
 0x1a8   : > { %v1563_v10 = vpop.f32.mrb[9].mxu0 }
 0x1a9   : > { %v1618_v11 = vpop.f32.mrb[8].mxu1  ;;  %v769_v13 = vadd.f32 %v1617_v6, %v664_v7  ;;  %v1564_v14 = vadd.f32 %v1563_v10, %v1562_v8 }
 0x1aa   : > { %v1619_v15 = vpop.f32.mrb[9].mxu1 }
 0x1ab   : > { %v1620_v16 = vadd.f32 %v1619_v15, %v1618_v11  ;;  %v1827_v17 = vpack.c.bf16 %v769_v13, %v764_v3  ;;  %v669_v18 = vadd.f32 %v1564_v14, %v2645_v33  ;;  %v1565_v19 = vpop.f32.mrb[10].mxu0  ;;  %1699 = vmatmul.mubr.msk.f32.gmra.mrb[18].mxu0 %vm474_vm5, %v769_v13 }
 0x1ac   : > { %v1566_v21 = vpop.f32.mrb[11].mxu0 }
 0x1ad   : > { %v1621_v22 = vpop.f32.mrb[10].mxu1  ;;  %v774_v24 = vadd.f32 %v1620_v16, %v669_v18  ;;  %v1567_v25 = vadd.f32 %v1566_v21, %v1565_v19  ;;  %1829 = vmatpush3.bf16.msk.msra.mxu1 %vm1828_vm6, %v1827_v17 }
 0x1ae   : > { %v1622_v26 = vpop.f32.mrb[11].mxu1  ;;  %1830 = vmatprep.subr.bf16.mxu1 %v2294_v27 }
 0x1af   : > { %v1623_v28 = vadd.f32 %v1622_v26, %v1621_v22  ;;  %v674_v31 = vadd.f32 %v1567_v25, %v2645_v33  ;;  %v1568_v32 = vpop.f32.mrb[12].mxu0  ;;  %1701 = vmatprep.mubr.msk.f32.mxu0 %vm475_vm7, %v774_v24 }
 0x1b0   : > { %v1569_v35 = vpop.f32.mrb[13].mxu0 }
 0x1b1   : > { %v1624_v37 = vpop.f32.mrb[12].mxu1  ;;  %v779_v39 = vadd.f32 %v1623_v28, %v674_v31  ;;  %v1570_v40 = vadd.f32 %v1569_v35, %v1568_v32  ;;  %v2295_v31 = vmov 0  }
 0x1b2   : > { %v1625_v41 = vpop.f32.mrb[13].mxu1  ;;  %1976 = vset.pattern.permute.xlu1 %v2295_v31 }
 0x1b3   : > { %v1626_v43 = vadd.f32 %v1625_v41, %v1624_v37  ;;  %v1831_v44 = vpack.c.bf16 %v779_v39, %v774_v24  ;;  %v679_v45 = vadd.f32 %v1570_v40, %v2645_v33  ;;  %v1571_v46 = vpop.f32.mrb[14].mxu0  ;;  %1702 = vmatmul.mubr.msk.f32.gmra.mrb[20].mxu0 %vm476_vm8, %v779_v39  ;;  %v1493_v40 = vld [vmem:[#allocation5] ss:$0 sm:$0xff] }
 0x1b4   : > { %v1572_v48 = vpop.f32.mrb[15].mxu0 }
 0x1b5   : > { %v1627_v49 = vpop.f32.mrb[14].mxu1  ;;  %v784_v50 = vadd.f32 %v1626_v43, %v679_v45  ;;  %v1573_v51 = vadd.f32 %v1572_v48, %v1571_v46  ;;  %1833 = vmatpush3.bf16.msk.msra.mxu1 %vm1832_vm9, %v1831_v44 }
 0x1b6   : > { %v1628_v52 = vpop.f32.mrb[15].mxu1  ;;  %1834 = vmatprep.subr.bf16.mxu1 %v2294_v27  ;;  %v1483_v27 = vld [vmem:[%s2914_s4] ss:$0 sm:$0xff] }
 0x1b7   : > { %v1629_v53 = vadd.f32 %v1628_v52, %v1627_v49  ;;  %v684_v54 = vadd.f32 %v1573_v51, %v2645_v33  ;;  %1704 = vmatprep.mubr.msk.f32.mxu0 %vm477_vm10, %v784_v50 }
 0x1b9   : > { %v789_v30 = vadd.f32 %v1629_v53, %v684_v54 }
 0x1bb   : > { %v1835_v56 = vpack.c.bf16 %v789_v30, %v784_v50  ;;  %1705 = vmatmul.mubr.msk.f32.gmra.mrb[22].mxu0 %vm478_vm11, %v789_v30 }
 0x1bd   : > { %1837 = vmatpush3.bf16.msk.msra.mxu1 %vm1836_vm12, %v1835_v56 }
 0x276   : > { %v1697_v33 = vpop.f32.mrb[16].mxu0 }
 0x277   : > { %v911_v57 = vadd.f32 %v1697_v33, %v1483_v27  ;;  %v905_v58 = vpop.f32.mrb[17].mxu0 }
 0x278   : > { %v906_v59 = vadd.f32 %v1483_v27, %v905_v58 }
 0x279   : > { %1978 = vtanh.f32 %v911_v57 }
 0x27a   : > { %1980 = vtanh.f32 %v906_v59 }
 0x27e   : > { %v1700_v60 = vpop.f32.mrb[18].mxu0 }
 0x27f   : > { %v921_v61 = vadd.f32 %v1700_v60, %v1483_v27  ;;  %v915_v62 = vpop.f32.mrb[19].mxu0 }
 0x280   : > { %v916_v0 = vadd.f32 %v1483_v27, %v915_v62 }
 0x281   : > { %1982 = vtanh.f32 %v921_v61 }
 0x282   : > { %1984 = vtanh.f32 %v916_v0 }
 0x283   : > { %v1979_v2 = vpop.eup %1978 }
 0x284   : > { %v960_v3 = vmul.f32 %v1979_v2, %v1492_v1  ;;  %v1981_v4 = vpop.eup %1980 }
 0x285   : > { %v959_v9 = vmul.f32 %v1981_v4, %v1492_v1 }
 0x286   : > { %969 = vadd.xlane.f32.xlu0 %v960_v3  ;;  %v1703_v5 = vpop.f32.mrb[20].mxu0 }
 0x287   : > { %v931_v6 = vadd.f32 %v1703_v5, %v1483_v27  ;;  %v925_v7 = vpop.f32.mrb[21].mxu0 }
 0x288   : > { %v926_v8 = vadd.f32 %v1483_v27, %v925_v7 }
 0x289   : > { %1986 = vtanh.f32 %v931_v6 }
 0x28a   : > { %1988 = vtanh.f32 %v926_v8  ;;  %967 = vadd.xlane.f32.xlu0 %v959_v9 }
 0x28b   : > { %v1983_v10 = vpop.eup %1982 }
 0x28c   : > { %v962_v11 = vmul.f32 %v1983_v10, %v1492_v1  ;;  %v1985_v13 = vpop.eup %1984  ;;  %v1006_v10 = vld [vmem:[#allocation2] sm:$0x1] }
 0x28d   : > { %v961_v18 = vmul.f32 %v1985_v13, %v1492_v1 }
 0x28e   : > { %973 = vadd.xlane.f32.xlu1 %v962_v11  ;;  %v1706_v14 = vpop.f32.mrb[22].mxu0  ;;  %v1036_v11 = vsub.s32 0, %v2637_v29 }
 0x28f   : > { %v941_v15 = vadd.f32 %v1706_v14, %v1483_v27  ;;  %v935_v16 = vpop.f32.mrb[23].mxu0 }
 0x290   : > { %v936_v17 = vadd.f32 %v1483_v27, %v935_v16 }
 0x291   : > { %1990 = vtanh.f32 %v941_v15 }
 0x292   : > { %1992 = vtanh.f32 %v936_v17  ;;  %971 = vadd.xlane.f32.xlu1 %v961_v18 }
 0x293   : > { %v1987_v19 = vpop.eup %1986 }
 0x294   : > { %v1989_v21 = vpop.eup %1988  ;;  %v964_v22 = vmul.f32 %v1987_v19, %v1492_v1 }
 0x295   : > { %v963_v23 = vmul.f32 %v1989_v21, %v1492_v1 }
 0x296   : > { %977 = vadd.xlane.f32.xlu1 %v964_v22 }
 0x297   : > { %975 = vadd.xlane.f32.xlu0 %v963_v23 }
 0x29b   : > { %v1991_v24 = vpop.eup %1990 }
 0x29c   : > { %v1993_v25 = vpop.eup %1992  ;;  %v966_v26 = vmul.f32 %v1991_v24, %v1492_v1 }
 0x29d   : > { %v965_v28 = vmul.f32 %v1993_v25, %v1492_v1 }
 0x29e   : > { %981 = vadd.xlane.f32.xlu1 %v966_v26 }
 0x29f   : > { %979 = vadd.xlane.f32.xlu0 %v965_v28 }
 0x313   : > { %v970_v32 = vpop.xlane.xlu0 %969 }
 0x314   : > { %v991_v45 = vadd.f32 %v1493_v40, %v970_v32 }
 0x316   : > { %v999_v52 = vsel %vm472_vm2, %v991_v45, -1e+30 }
 0x317   : > { %v968_v37 = vpop.xlane.xlu0 %967  ;;  %v1009_v42 = vsel %vm1007_vm13, %v999_v52, -inf }
 0x318   : > { %v990_v46 = vadd.f32 %v1493_v40, %v968_v37 }
 0x31a   : > { %v998_v53 = vsel %vm471_vm1, %v990_v46, -1e+30 }
 0x31b   : > { %v974_v34 = vpop.xlane.xlu1 %973  ;;  %v1008_v58 = vsel %vm1007_vm13, %v998_v53, -inf }
 0x31c   : > { %v993_v48 = vadd.f32 %v1493_v40, %v974_v34 }
 0x31e   : > { %v1001_v54 = vsel %vm474_vm5, %v993_v48, -1e+30 }
 0x31f   : > { %v972_v35 = vpop.xlane.xlu1 %971  ;;  %v1011_v36 = vsel %vm1007_vm13, %v1001_v54, -inf }
 0x320   : > { %v992_v49 = vadd.f32 %v1493_v40, %v972_v35 }
 0x322   : > { %v1000_v12 = vsel %vm473_vm4, %v992_v49, -1e+30 }
 0x323   : > { %v978_v39 = vpop.xlane.xlu1 %977  ;;  %v1010_v55 = vsel %vm1007_vm13, %v1000_v12, -inf }
 0x324   : > { %v976_v41 = vpop.xlane.xlu0 %975  ;;  %v995_v43 = vadd.f32 %v1493_v40, %v978_v39 }
 0x325   : > { %v994_v44 = vadd.f32 %v1493_v40, %v976_v41 }
 0x326   : > { %v1003_v50 = vsel %vm476_vm8, %v995_v43, -1e+30  ;;  %v2297_v43 = vmov 0.0  }
 0x327   : > { %v1002_v51 = vsel %vm475_vm7, %v994_v44, -1e+30  ;;  %v1014_v56 = vsel %vm1007_vm13, %v1003_v50, -inf  ;;  %1723 = vmatprep.mubr.msk.f32.mxu1 %vm2296_vm15, %v2297_v43 }
 0x328   : > { %v1012_v27 = vsel %vm1007_vm13, %v1002_v51, -inf  ;;  %v1015_v59 = vmax.f32 %v1009_v42, %v1014_v56 }
 0x329   : > { %v1013_v60 = vmax.f32 %v1008_v58, %v1012_v27 }
 0x32b   : > { %v982_v30 = vpop.xlane.xlu1 %981  ;;  %v1020_v3 = vmax.f32 %v1013_v60, %v1015_v59 }
 0x32c   : > { %v997_v20 = vadd.f32 %v1493_v40, %v982_v30  ;;  %v980_v33 = vpop.xlane.xlu0 %979 }
 0x32d   : > { %v996_v57 = vadd.f32 %v1493_v40, %v980_v33 }
 0x32e   : > { %v1005_v63 = vsel %vm478_vm11, %v997_v20, -1e+30 }
 0x32f   : > { %v1018_v61 = vsel %vm1007_vm13, %v1005_v63, -inf  ;;  %v1004_v62 = vsel %vm477_vm10, %v996_v57, -1e+30 }
 0x330   : > { %v1019_v0 = vmax.f32 %v1011_v36, %v1018_v61  ;;  %v1016_v1 = vsel %vm1007_vm13, %v1004_v62, -inf }
 0x331   : > { %v1017_v2 = vmax.f32 %v1010_v55, %v1016_v1  ;;  %v1063_v1 = vld [vmem:[#allocation3] sm:$0x1] }
 0x333   : > { %v1021_v4 = vmax.f32 %v1017_v2, %v1019_v0 }
 0x335   : > { %v1022_v5 = vmax.f32 %v1020_v3, %v1021_v4 }
 0x337   : > { %v1023_v6 = vrot.slane %v1022_v5, 4 }
 0x339   : > { %v1024_v7 = vmax.f32 %v1022_v5, %v1023_v6 }
 0x33b   : > { %v1025_v47 = vrot.slane %v1024_v7, 2 }
 0x33d   : > { %v1026_v8 = vmax.f32 %v1024_v7, %v1025_v47 }
 0x33f   : > { %v1027_v9 = vrot.slane %v1026_v8, 1 }
 0x341   : > { %v1028_v13 = vmax.f32 %v1026_v8, %v1027_v9  ;;  %v1089_v8 = vld [vmem:[#allocation4] sm:$0x1] }
 0x343   : > { %v1029_v38 = vmax.f32 %v1006_v10, %v1028_v13 }
 0x345   : > { %v1030_v14 = vsub.f32 %v1006_v10, %v1029_v38  ;;  %v1037_v15 = vrot.slane %v1029_v38, %v1036_v11  ;;  %1208 = vst.msk [vmem:[#allocation2] sm:$0x1] %vm1087_vm14, %v1029_v38 }
 0x347   : > { %v1031_v16 = vmul.f32 1.442695, %v1030_v14  ;;  %v1041_v17 = vsub.f32 %v1000_v12, %v1037_v15  ;;  %v1039_v18 = vsub.f32 %v998_v53, %v1037_v15  ;;  %v1040_v19 = vsub.f32 %v999_v52, %v1037_v15 }
 0x348   : > { %v1042_v21 = vsub.f32 %v1001_v54, %v1037_v15  ;;  %v1043_v22 = vsub.f32 %v1002_v51, %v1037_v15  ;;  %v1044_v26 = vsub.f32 %v1003_v50, %v1037_v15  ;;  %v1045_v32 = vsub.f32 %v1004_v62, %v1037_v15 }
 0x349   : > { %1994 = vpow2.f32 %v1031_v16  ;;  %v1047_v23 = vmul.f32 1.442695, %v1039_v18  ;;  %v1049_v24 = vmul.f32 1.442695, %v1040_v19  ;;  %v1051_v25 = vmul.f32 1.442695, %v1041_v17 }
 0x34a   : > { %v1053_v28 = vmul.f32 1.442695, %v1042_v21  ;;  %v1055_v34 = vmul.f32 1.442695, %v1043_v22  ;;  %v1046_v35 = vsub.f32 %v1005_v63, %v1037_v15  ;;  %v1057_v37 = vmul.f32 1.442695, %v1044_v26 }
 0x34b   : > { %1996 = vpow2.f32 %v1047_v23  ;;  %v1059_v39 = vmul.f32 1.442695, %v1045_v32 }
 0x34c   : > { %1998 = vpow2.f32 %v1049_v24  ;;  %v1061_v41 = vmul.f32 1.442695, %v1046_v35  ;;  %v1504_v14 = vld [vmem:[#allocation2] ss:$0 sm:$0xff] (!%p1503_p4) }
 0x34d   : > { %2000 = vpow2.f32 %v1051_v25 }
 0x34e   : > { %2002 = vpow2.f32 %v1053_v28 }
 0x34f   : > { %2004 = vpow2.f32 %v1055_v34 }
 0x350   : > { %2006 = vpow2.f32 %v1057_v37 }
 0x351   : > { %2008 = vpow2.f32 %v1059_v39 }
 0x352   : > { %2010 = vpow2.f32 %v1061_v41 }
 0x353   : > { %v1995_v40 = vpop.eup %1994 }
 0x354   : > { %1092 = vperm.xlu1 %1976, %v1995_v40   ;;  %v1064_v3 = vmul.f32 %v1995_v40, %v1063_v1 }
 0x355   : > { %v1997_v44 = vpop.eup %1996 }
 0x356   : > { %v1999_v45 = vpop.eup %1998  ;;  %1100 = vxpose.xlu0.b32.start [1/8] (short) (narrow) %v1997_v44, 8  ;;  %v1065_v46 = vsel %vm1007_vm13, %v1997_v44, 0.0 }
 0x357   : > { %v2001_v48 = vpop.eup %2000  ;;  %v1066_v49 = vsel %vm1007_vm13, %v1999_v45, 0.0 }
 0x358   : > { %v2003_v50 = vpop.eup %2002  ;;  %v1067_v51 = vadd.f32 %v1066_v49, %v1065_v46  ;;  %v1068_v52 = vsel %vm1007_vm13, %v2001_v48, 0.0 }
 0x359   : > { %v2005_v53 = vpop.eup %2004  ;;  %v1070_v30 = vsel %vm1007_vm13, %v2003_v50, 0.0 }
 0x35a   : > { %v1069_v54 = vadd.f32 %v1068_v52, %v1067_v51  ;;  %1101 = vxpose.xlu0.b32.cont [2/8] (short) (narrow) %v1999_v45, 8  ;;  %v2007_v56 = vpop.eup %2006  ;;  %v1072_v20 = vsel %vm1007_vm13, %v2005_v53, 0.0 }
 0x35b   : > { %v2009_v33 = vpop.eup %2008  ;;  %v1074_v57 = vsel %vm1007_vm13, %v2007_v56, 0.0 }
 0x35c   : > { %v1071_v27 = vadd.f32 %v1070_v30, %v1069_v54  ;;  %v2011_v42 = vpop.eup %2010  ;;  %v1076_v36 = vsel %vm1007_vm13, %v2009_v33, 0.0 }
 0x35d   : > { %v1078_v59 = vsel %vm1007_vm13, %v2011_v42, 0.0 }
 0x35e   : > { %v1073_v12 = vadd.f32 %v1072_v20, %v1071_v27  ;;  %1102 = vxpose.xlu0.b32.cont [3/8] (short) (narrow) %v2001_v48, 8 }
 0x360   : > { %v1075_v58 = vadd.f32 %v1074_v57, %v1073_v12 }
 0x362   : > { %v1077_v63 = vadd.f32 %v1076_v36, %v1075_v58  ;;  %1103 = vxpose.xlu0.b32.cont [4/8] (short) (narrow) %v2003_v50, 8 }
 0x364   : > { %v1079_v60 = vadd.f32 %v1078_v59, %v1077_v63 }
 0x366   : > { %v1080_v61 = vrot.slane %v1079_v60, 4  ;;  %1104 = vxpose.xlu0.b32.cont [5/8] (short) (narrow) %v2005_v53, 8 }
 0x368   : > { %v1081_v62 = vadd.f32 %v1080_v61, %v1079_v60 }
 0x36a   : > { %v1082_v55 = vrot.slane %v1081_v62, 2  ;;  %1105 = vxpose.xlu0.b32.cont [6/8] (short) (narrow) %v2007_v56, 8 }
 0x36c   : > { %v1083_v0 = vadd.f32 %v1082_v55, %v1081_v62 }
 0x36e   : > { %v1084_v2 = vrot.slane %v1083_v0, 1  ;;  %1106 = vxpose.xlu0.b32.cont [7/8] (short) (narrow) %v2009_v33, 8 }
 0x370   : > { %v1085_v4 = vadd.f32 %v1084_v2, %v1083_v0 }
 0x372   : > { %v1086_v5 = vadd.f32 %v1085_v4, %v1064_v3  ;;  %1107 = vxpose.xlu0.b32.end [8/8] (short) (narrow) %v2011_v42, 8 }
 0x374   : > { %1088 = vst.msk [vmem:[#allocation3] sm:$0x1] %vm1087_vm14, %v1086_v5 }
 0x37b   : > { %v1505_v15 = vld [vmem:[#allocation3] ss:$0 sm:$0xff] (!%p1503_p4) }
 0x39b   : > { %1977 = vset.pattern.permute.xlu0 %v2295_v31  ;;  %v2298_v31 = vmov (!%p1503_p4), 0  }
 0x39c   : > { %2012 = vset.pattern.permute.xlu0 (!%p1503_p4), %v2298_v31 }
 0x39d   : > { %1220 = vperm.xlu0 (!%p1503_p4), %2012, %v1504_v14  }
 0x3a1   : > { %1231 = vperm.xlu0 (!%p1503_p4), %2012, %v1505_v15  }
 0x3d3   : > { %v1093_v7 = vpop.permute.xlu1 %1092 }
 0x3d4   : > { %v1098_v47 = vrot.slane %v1093_v7, %v1036_v11 }
 0x3d6   : > { %v1116_v6 = vpop.trf.xlu0  ;;  %v1099_v9 = vmul.f32 %v1098_v47, %v1089_v8 }
 0x3d7   : > { %1724 = vmatmul.mubr.msk.f32.vlgmr.msra.gmra.mrb[16].mxu1 %vm1132_vm0, %v1116_v6 }
 0x41c   : > { %v1221_v29 = vpop.permute.xlu0 (!%p1503_p4), %1220 }
 0x41d   : > { %1223 = vst [vmem:[%s417_s30] sm:$0xff] (!%p1503_p4), %v1221_v29 }
 0x420   : > { %v1232_v11 = vpop.permute.xlu0 (!%p1503_p4), %1231 }
 0x421   : > { %1234 = vst [vmem:[%s424_s29] sm:$0xff] (!%p1503_p4), %v1232_v11 }
 0x4a7   : > { %1212 = sbr.rel (%p1503_p4) target bundleno = 1206 (0x4b6), region = 68 }
 0x4aa   : > { %v1202_v10 = vpop.f32.mrb[16].mxu1 }
 0x4ab   : > { %v1206_v13 = vadd.f32 %v1202_v10, %v1099_v9  ;;  %v1725_v38 = vpop.f32.mrb[17].mxu1 }
 0x4ad   : > { %1207 = vst [vmem:[#allocation4] sm:$0x1] %v1206_v13 }
 0x4b4   : > { %v1506_v16 = vld [vmem:[#allocation4] ss:$0 sm:$0xff] }
 0x4b5   : > { %1242 = vst [vmem:[%s431_s14] sm:$0xff] %v1506_v16 }
 0x4b6 PF: > { %s2961_s6 = sld [smem:[#allocation28_spill]]  ;;  %s1248_s24 = sand.u32 1, %s2411_s21  }
 0x4b7   : > { %s2962_s23 = sld [smem:[#allocation31_spill]]  ;;  %s1280_s9 = sshll.u32 %s424_s29, 4  ;;  %s1281_s9 = int_to_ptr.vmem [resolvable:$true] %s1280_s9 }
 0x4b8   : > { %s2792_s11 = scalar_lea.sflag [#allocation14], %s1248_s24  ;;  %s2097_s13 = scalar_lea.vmem %s1281_s9, 128 }
 0x4b9   : > { %p2098_p6 = scmp.ne.s32.totalorder %s1281_s9, %s2097_s13  ;;  %s2299_s10 = smov [#allocation13]  }
 0x4ba   : > { %s2101_s17 = sshll.u32 %s2299_s10, 4  ;;  %s2102_s17 = int_to_ptr.vmem [resolvable:$false] %s2101_s17 }
 0x4bb   : > { %s2103_s19 = scalar_lea.vmem %s2102_s17, 256  ;;  %p2104_p13 = scmp.lt.s32.totalorder %s1281_s9, %s2102_s17 }
 0x4bc   : > { %p2963_p10 = scmp.ne.s32.totalorder %s2961_s6, 0  ;;  %p2105_p9 = scmp.lt.s32.totalorder %s2103_s19, %s2097_s13 }
 0x4bd   : > { %s2788_s26 = scalar_lea.hbm %s2962_s23, %s2633_s25 }
 0x4be   : > { %p2099_p7 = pnand %p2098_p6, %p2963_p10  ;;  %p2106_p2 = por %p2105_p9, %p2104_p13 }
 0x4c0   : > { %p2100_p5 = pneg %p2099_p7 }
 0x4c2   : > { %p2107_p8 = pnand %p2106_p2, %p2100_p5 }
 0x4c4   : > { %2110 = shalt.err (!%p2107_p8)
}
 0x4c5   : > { %s2111_s21 = scalar_lea.hbm %s2788_s26, 128  ;;  %s2115_s18 = scalar_lea.hbm %s2962_s23, 256 }
 0x4c6   : > { %p2112_p3 = scmp.ne.s32.totalorder %s2788_s26, %s2111_s21  ;;  %p2116_p11 = scmp.lt.u32.totalorder %s2788_s26, %s2962_s23 }
 0x4c7   : > { %p2117_p1 = scmp.lt.u32.totalorder %s2115_s18, %s2111_s21  ;;  %p2119_p6 = scmp.lt.u32.totalorder %s2111_s21, %s2788_s26 }
 0x4c8   : > { %p2113_p12 = pnand %p2112_p3, %p2963_p10 }
 0x4c9   : > { %p2118_p4 = por %p2117_p1, %p2116_p11 }
 0x4ca   : > { %p2114_p0 = pneg %p2113_p12 }
 0x4cb   : > { %p2120_p7 = por %p2119_p6, %p2118_p4 }
 0x4cd   : > { %p2121_p5 = pnand %p2120_p7, %p2114_p0 }
 0x4cf   : > { %2124 = shalt.err (!%p2121_p5)
}
 0x4d0   : > { %1848 = dma.vmem_to_hbm [thread:$0]  (%p2963_p10), %s1281_s9, 128, %s2788_s26, %s2792_s11  }
 0x4d1   : > { %s2964_s10 = sld [smem:[#allocation30_spill]]  ;;  %s1267_s19 = sshll.u32 %s417_s30, 4  ;;  %s2820_s19 = int_to_ptr.vmem [resolvable:$true] %s1267_s19 }
 0x4d2   : > { %s2965_s28 = sld [smem:[#allocation32_spill]]  ;;  %s1244_s24 = scalar_lea.sflag [#allocation8], %s415_s22 }
 0x4d3   : > { %s2125_s26 = scalar_lea.vmem %s2820_s19, 128  ;;  %s2300_s9 = smov [#allocation12]  }
 0x4d4   : > { %p2126_p13 = scmp.ne.s32.totalorder %s2820_s19, %s2125_s26  ;;  %s2129_s7 = sshll.u32 %s2300_s9, 4  ;;  %s2130_s7 = int_to_ptr.vmem [resolvable:$false] %s2129_s7 }
 0x4d5   : > { %s2131_s30 = scalar_lea.vmem %s2130_s7, 256  ;;  %p2132_p8 = scmp.lt.s32.totalorder %s2820_s19, %s2130_s7 }
 0x4d6   : > { %p2127_p9 = pnand %p2126_p13, %p2963_p10  ;;  %p2133_p3 = scmp.lt.s32.totalorder %s2131_s30, %s2125_s26 }
 0x4d7   : > { %s2816_s17 = scalar_lea.hbm %s2964_s10, %s2633_s25 }
 0x4d8   : > { %s2826_s18 = scalar_lea.hbm %s2965_s28, %s2633_s25  ;;  %p2128_p2 = pneg %p2127_p9 }
 0x4d9   : > { %p2134_p12 = por %p2133_p3, %p2132_p8 }
 0x4db   : > { %p2135_p0 = pnand %p2134_p12, %p2128_p2 }
 0x4dd   : > { %2138 = shalt.err (!%p2135_p0)
}
 0x4de   : > { %s2139_s22 = scalar_lea.hbm %s2816_s17, 128  ;;  %s2143_s13 = scalar_lea.hbm %s2964_s10, 256 }
 0x4df   : > { %p2140_p11 = scmp.ne.s32.totalorder %s2816_s17, %s2139_s22  ;;  %p2144_p6 = scmp.lt.u32.totalorder %s2816_s17, %s2964_s10 }
 0x4e0   : > { %p2145_p7 = scmp.lt.u32.totalorder %s2143_s13, %s2139_s22  ;;  %p2147_p13 = scmp.lt.u32.totalorder %s2139_s22, %s2816_s17 }
 0x4e1   : > { %p2141_p1 = pnand %p2140_p11, %p2963_p10 }
 0x4e2   : > { %p2146_p5 = por %p2145_p7, %p2144_p6 }
 0x4e3   : > { %p2142_p4 = pneg %p2141_p1 }
 0x4e4   : > { %p2148_p9 = por %p2147_p13, %p2146_p5 }
 0x4e6   : > { %p2149_p2 = pnand %p2148_p9, %p2142_p4 }
 0x4e8   : > { %2152 = shalt.err (!%p2149_p2)
}
 0x4e9   : > { %1847 = dma.vmem_to_hbm [thread:$0]  (%p2963_p10), %s2820_s19, 128, %s2816_s17, %s1244_s24  }
 0x4ea   : > { %s1293_s26 = sshll.u32 %s431_s14, 4  ;;  %s2301_s7 = smov [#allocation15]   ;;  %s1294_s26 = int_to_ptr.vmem [resolvable:$true] %s1293_s26 }
 0x4eb   : > { %s2153_s9 = scalar_lea.vmem %s1294_s26, 128  ;;  %s2157_s30 = sshll.u32 %s2301_s7, 4  ;;  %s2158_s30 = int_to_ptr.vmem [resolvable:$false] %s2157_s30 }
 0x4ec   : > { %p2154_p8 = scmp.ne.s32.totalorder %s1294_s26, %s2153_s9  ;;  %s2159_s22 = scalar_lea.vmem %s2158_s30, 256 }
 0x4ed   : > { %p2160_p0 = scmp.lt.s32.totalorder %s1294_s26, %s2158_s30  ;;  %p2161_p11 = scmp.lt.s32.totalorder %s2159_s22, %s2153_s9 }
 0x4ee   : > { %p2155_p3 = pnand %p2154_p8, %p2963_p10 }
 0x4ef   : > { %p2162_p1 = por %p2161_p11, %p2160_p0 }
 0x4f0   : > { %p2156_p12 = pneg %p2155_p3 }
 0x4f2   : > { %p2163_p4 = pnand %p2162_p1, %p2156_p12 }
 0x4f4   : > { %2166 = shalt.err (!%p2163_p4)
}
 0x4f5   : > { %s2167_s27 = scalar_lea.hbm %s2826_s18, 128  ;;  %s2171_s19 = scalar_lea.hbm %s2965_s28, 256 }
 0x4f6   : > { %p2168_p6 = scmp.ne.s32.totalorder %s2826_s18, %s2167_s27  ;;  %p2172_p13 = scmp.lt.u32.totalorder %s2826_s18, %s2965_s28 }
 0x4f7   : > { %p2173_p9 = scmp.lt.u32.totalorder %s2171_s19, %s2167_s27  ;;  %p2175_p8 = scmp.lt.u32.totalorder %s2167_s27, %s2826_s18 }
 0x4f8   : > { %p2169_p7 = pnand %p2168_p6, %p2963_p10 }
 0x4f9   : > { %p2174_p2 = por %p2173_p9, %p2172_p13 }
 0x4fa   : > { %p2170_p5 = pneg %p2169_p7 }
 0x4fb   : > { %p2176_p3 = por %p2175_p8, %p2174_p2 }
 0x4fd   : > { %p2177_p12 = pnand %p2176_p3, %p2170_p5 }
 0x4ff   : > { %2180 = shalt.err (!%p2177_p12)
}
 0x500   : > { %1849 = dma.vmem_to_hbm [thread:$0]  (%p2963_p10), %s1294_s26, 128, %s2826_s18, %s2792_s11  }
 0x501 PF: > { %s2966_s8 = sld [smem:[#allocation20_spill]]  ;;  %s2967_s13 = sld [smem:[#allocation29_spill]] }
 0x502   : > { %p1874_p0 = scmp.ge.s32.totalorder %s2283_s20, 2 }
 0x507   : > { %s1305_s21 = sand.u32 1, %s2966_s8   ;;  %p2968_p11 = scmp.ne.s32.totalorder %s2967_s13, 0 }
 0x508   : > { %s1306_s29 = scalar_lea.sflag [#allocation8], %s1305_s21 }
 0x509   : > { %p1861_p1 = pnand %p1874_p0, %p2968_p11 }
 0x50b   : > { %2234 = dma.done.wait (!%p1861_p1), %s1306_s29, 128  }
 0x50c   : > { %2236 = vsyncadd (!%p1861_p1), %s1306_s29, 4294967168  ;;  %s2969_s9 = sadd.s32 4294967294, %s2283_s20  }
 0x50d   : > { %s1314_s7 = sand.u32 1, %s2969_s9  }
 0x50e   : > { %s1315_s30 = scalar_lea.sflag [#allocation14], %s1314_s7 }
 0x50f   : > { %2238 = dma.done.wait (!%p1861_p1), %s1315_s30, 256  }
 0x510   : > { %2240 = vsyncadd (!%p1861_p1), %s1315_s30, 4294967040  ;;  %s32_s20 = sadd.s32 1, %s2283_s20   ;;  %s2970_s6 = sld [smem:[#allocation21_spill]] }
 0x511   : > { %p29_p10 = scmp.ge.s32.totalorder %s32_s20, 6   ;;  %s2971_s13 = sld [smem:[#allocation26_spill]] }
 0x512   : > { %s2972_s18 = sld [smem:[#allocation27_spill]]  ;;  %s2973_s26 = sld [smem:[#allocation22_spill]] }
 0x513   : > { %s2974_s17 = sld [smem:[#allocation23_spill]]  ;;  %s2975_s22 = sld [smem:[#allocation24_spill]] }
 0x514   : > { %s2976_s19 = sld [smem:[#allocation25_spill]]  ;;  %s2977_s11 = smov %s2247_s12 }
 0x515   : > { %s2979_s14 = smov %s2259_s15  ;;  %s2980_s15 = smov %s2263_s16 }
 0x516   : > { %s2978_s12 = smov %s2970_s6  ;;  %31 = sbr.rel (!%p29_p10) target bundleno = 16 (0x10), region = 141 }
 0x518   : > { %s2981_s16 = smov %s2972_s18  ;;  %s2982_s6 = smov %s2973_s26 }
 0x519   : > { %s2983_s18 = smov %s2975_s22 }
 0x51d   :  { %1329 = vsyncpa [#allocation7], 1 }
 0x51e   :  { %1331 = vsyncpa [#allocation7 + $0x1], 1 }
 0x51f   :  { %1332 = vsyncpa [#allocation10], 1 }
 0x520   :  { %1333 = vsyncpa [#allocation8], 1 }
 0x521   :  { %1335 = vsyncpa [#allocation8 + $0x1], 1 }
 0x522   :  { %1336 = vsyncpa [#allocation14], 1 }
 0x523   :  { %1338 = vsyncpa [#allocation14 + $0x1], 1 }

</bundles_post_ra>
